<compile_context>
chip_gen: v6e
topology: v6e:2x2x1
jax: 0.10.0
libtpu: 0.0.40
codegen_flags: <defaults>
</compile_context>

<pallas_src>
import functools

import jax
import jax.numpy as jnp
from jax.experimental import pallas as pl
from jax.experimental.pallas import tpu as pltpu

BN_EPS = 1e-5
LANE = 128


def _round_up(x, m):
    return ((x + m - 1) // m) * m


# ---------------------------------------------------------------------------
# Fused Pallas kernel: conv1(1x1)+BN+ReLU (+shortcut matmul) -> dw3x3+BN+ReLU
#                      -> conv3(1x1)+BN, one batch item per grid step.
# ---------------------------------------------------------------------------
def _block_kernel(x_ref, w1_ref, b1_ref, w2_ref, b2_ref, w3_ref, b3_ref,
                  o_ref, xpad_ref, *,
                  stride, h, w, hout, wout, planes_p, cout, has_shortcut):
    wp8 = xpad_ref.shape[1]                 # row pitch (multiple of 8 sublanes)
    x_flat = x_ref[0]                       # (h*w, cin) — pre-flattened

    # ---- conv1 (1x1 expand) + BN1 + ReLU, fused with the shortcut projection
    #      as a single MXU matmul (weights concatenated along N in wrapper).
    y = jnp.dot(x_flat, w1_ref[...], preferred_element_type=jnp.float32)
    if has_shortcut:
        y1 = jnp.maximum(y[:, :planes_p] + b1_ref[...], 0.0)
        sc = y[:, planes_p:]                # (h*w, cout_p), lane-aligned slice
    else:
        y1 = jnp.maximum(y + b1_ref[...], 0.0)
        sc = None

    # ---- expanded activation stays in VMEM.  Zero only the halo ring (thin
    #      strips); the interior is fully overwritten below.
    xpad_ref[0:1, :, :] = jnp.zeros((1, wp8, planes_p), jnp.float32)
    xpad_ref[h + 1:h + 2, :, :] = jnp.zeros((1, wp8, planes_p), jnp.float32)
    xpad_ref[1:h + 1, 0:1, :] = jnp.zeros((h, 1, planes_p), jnp.float32)
    xpad_ref[1:h + 1, w + 1:w + 2, :] = jnp.zeros((h, 1, planes_p), jnp.float32)
    xpad_ref[1:h + 1, 1:w + 1, :] = y1.reshape(h, w, planes_p)

    # ---- 3x3 depthwise conv (BN2 scale folded into the taps): nine shifted
    #      multiply-adds accumulated in registers (no scratch accumulator, no
    #      VMEM read-modify-write), evaluated only at output positions.
    acc = None
    for kh in range(3):
        for kw in range(3):
            if stride == 1:
                win = xpad_ref[kh:kh + hout, kw:kw + wout, :]
            else:
                win = xpad_ref[pl.ds(kh, hout, stride),
                               pl.ds(kw, wout, stride), :]
            term = win * w2_ref[kh:kh + 1, kw:kw + 1, :]
            acc = term if acc is None else acc + term
    y2 = jnp.maximum(acc + b2_ref[...], 0.0)
    y2_flat = y2.reshape(hout * wout, planes_p)

    # ---- conv3 (1x1 project) + BN3 (+ shortcut), then transpose in-kernel so
    #      the store is channel-major with a dense hout*wout lane dimension and
    #      the 128-padded channels are dropped before touching HBM.
    out = jnp.dot(y2_flat, w3_ref[...], preferred_element_type=jnp.float32)
    out = out + b3_ref[...]
    if has_shortcut:
        out = out + sc
    o_ref[0] = jnp.transpose(out)[:cout].astype(o_ref.dtype)


# ---------------------------------------------------------------------------
# Parameter construction (deterministic, synthetic; inference-mode BatchNorm)
# ---------------------------------------------------------------------------
def _bn_params(key, c):
    k1, k2, k3, k4 = jax.random.split(key, 4)
    gamma = jax.random.uniform(k1, (c,), jnp.float32, 0.5, 1.5)
    beta = jax.random.normal(k2, (c,), jnp.float32) * 0.1
    mean = jax.random.normal(k3, (c,), jnp.float32) * 0.1
    var = jax.random.uniform(k4, (c,), jnp.float32, 0.5, 1.5)
    return gamma, beta, mean, var


def _bn_fold(bn):
    gamma, beta, mean, var = bn
    scale = gamma / jnp.sqrt(var + BN_EPS)
    bias = beta - scale * mean
    return scale, bias


def make_block_params(key, in_planes, out_planes, expansion, stride):
    planes = expansion * in_planes
    keys = jax.random.split(key, 8)
    params = {
        "w1": jax.random.normal(keys[0], (in_planes, planes), jnp.float32) * 0.1,
        "bn1": _bn_params(keys[1], planes),
        "w2": jax.random.normal(keys[2], (3, 3, planes), jnp.float32) * 0.1,
        "bn2": _bn_params(keys[3], planes),
        "w3": jax.random.normal(keys[4], (planes, out_planes), jnp.float32) * 0.1,
        "bn3": _bn_params(keys[5], out_planes),
    }
    if stride == 1 and in_planes != out_planes:
        params["ws"] = jax.random.normal(keys[6], (in_planes, out_planes), jnp.float32) * 0.1
        params["bns"] = _bn_params(keys[7], out_planes)
    return params


# ---------------------------------------------------------------------------
# Block forward (MobileNetV2 inverted residual) — single fused pallas_call
# ---------------------------------------------------------------------------
def block_forward(x_nchw, params, stride):
    x = jnp.transpose(x_nchw, (0, 2, 3, 1)).astype(jnp.float32)   # NCHW -> NHWC
    n, h, w, cin = x.shape
    x = x.reshape(n, h * w, cin)        # pre-flattened; metadata-only on NHWC

    planes = params["w1"].shape[1]
    cout = params["w3"].shape[1]
    planes_p = _round_up(planes, LANE)
    cout_p = _round_up(cout, LANE)
    wp8 = _round_up(w + 2, 8)
    hout = (h - 1) // stride + 1
    wout = (w - 1) // stride + 1
    has_shortcut = (stride == 1)

    # Fold BN into weights / biases; zero-pad channel dims to 128 multiples so
    # matmul N dims and VPU ops are lane-dense (padded channels stay zero).
    s1, b1 = _bn_fold(params["bn1"])
    w1p = jnp.zeros((cin, planes_p), jnp.float32).at[:, :planes].set(
        params["w1"] * s1[None, :])
    b1p = jnp.zeros((1, planes_p), jnp.float32).at[0, :planes].set(b1)

    s2, b2 = _bn_fold(params["bn2"])
    w2p = jnp.zeros((3, 3, planes_p), jnp.float32).at[:, :, :planes].set(
        params["w2"] * s2[None, None, :])
    b2p = jnp.zeros((1, 1, planes_p), jnp.float32).at[0, 0, :planes].set(b2)

    s3, b3 = _bn_fold(params["bn3"])
    w3p = jnp.zeros((planes_p, cout_p), jnp.float32).at[:planes, :cout].set(
        params["w3"] * s3[None, :])

    if has_shortcut:
        if cin != cout:
            ss, bs = _bn_fold(params["bns"])
            ws_mat = params["ws"] * ss[None, :]
            b3 = b3 + bs                                 # fold shortcut-BN bias
        else:
            ws_mat = jnp.eye(cin, dtype=jnp.float32)     # identity shortcut
        wsp = jnp.zeros((cin, cout_p), jnp.float32).at[:, :cout].set(ws_mat)
        w1cat = jnp.concatenate([w1p, wsp], axis=1)      # (cin, planes_p+cout_p)
    else:
        w1cat = w1p
    b3p = jnp.zeros((1, cout_p), jnp.float32).at[0, :cout].set(b3)
    ncols = w1cat.shape[1]

    # Explicit VMEM budget: scratch + double-buffered I/O tiles + weights +
    # headroom for compiler-managed value temporaries.
    xpad_bytes = (h + 2) * wp8 * planes_p * 4
    io_bytes = (h * w * cin + cout * hout * wout) * 4
    wgt_bytes = (cin * ncols + planes_p + 9 * planes_p + planes_p
                 + planes_p * cout_p + cout_p) * 4
    tmp_bytes = (h * w * ncols + 2 * hout * wout * planes_p
                 + hout * wout * cout_p) * 4
    vmem_limit = int(min(64 << 20,
                         max(32 << 20,
                             xpad_bytes + 2 * io_bytes + 2 * wgt_bytes
                             + 2 * tmp_bytes + (8 << 20))))

    kernel = functools.partial(
        _block_kernel, stride=stride, h=h, w=w, hout=hout, wout=wout,
        planes_p=planes_p, cout=cout, has_shortcut=has_shortcut)

    out = pl.pallas_call(
        kernel,
        out_shape=jax.ShapeDtypeStruct((n, cout, hout * wout), jnp.float32),
        grid=(n,),
        in_specs=[
            pl.BlockSpec((1, h * w, cin), lambda b: (b, 0, 0)),
            pl.BlockSpec((cin, ncols), lambda b: (0, 0)),
            pl.BlockSpec((1, planes_p), lambda b: (0, 0)),
            pl.BlockSpec((3, 3, planes_p), lambda b: (0, 0, 0)),
            pl.BlockSpec((1, 1, planes_p), lambda b: (0, 0, 0)),
            pl.BlockSpec((planes_p, cout_p), lambda b: (0, 0)),
            pl.BlockSpec((1, cout_p), lambda b: (0, 0)),
        ],
        out_specs=pl.BlockSpec((1, cout, hout * wout), lambda b: (b, 0, 0)),
        scratch_shapes=[
            pltpu.VMEM((h + 2, wp8, planes_p), jnp.float32),  # padded expanded act
        ],
        compiler_params=pltpu.CompilerParams(
            dimension_semantics=("parallel",),
            vmem_limit_bytes=vmem_limit),
    )(x, w1cat, b1p, w2p, b2p, w3p, b3p)

    return out.reshape(n, cout, hout, wout)      # NCHW; metadata-only reshape


# ---------------------------------------------------------------------------
# Pure-JAX reference (inference-mode BN) for a numerical self-check
# ---------------------------------------------------------------------------
def _reference_block(x_nchw, params, stride):
    hp = jax.lax.Precision.HIGHEST
    x = jnp.transpose(x_nchw, (0, 2, 3, 1))
    cin = x.shape[-1]

    s1, b1 = _bn_fold(params["bn1"])
    y = jnp.maximum(jnp.einsum("nhwc,cd->nhwd", x, params["w1"], precision=hp) * s1 + b1, 0.0)

    s2, b2 = _bn_fold(params["bn2"])
    yp = jnp.pad(y, ((0, 0), (1, 1), (1, 1), (0, 0)))
    n, hpad, wpad, c = yp.shape
    hout = (hpad - 3) // stride + 1
    wout = (wpad - 3) // stride + 1
    acc = jnp.zeros((n, hout, wout, c), jnp.float32)
    for kh in range(3):
        for kw in range(3):
            win = jax.lax.slice(
                yp, (0, kh, kw, 0),
                (n, kh + stride * (hout - 1) + 1, kw + stride * (wout - 1) + 1, c),
                (1, stride, stride, 1))
            acc = acc + win * params["w2"][kh, kw]
    y2 = jnp.maximum(acc * s2 + b2, 0.0)

    s3, b3 = _bn_fold(params["bn3"])
    out = jnp.einsum("nhwc,cd->nhwd", y2, params["w3"], precision=hp) * s3 + b3
    if stride == 1:
        cout = out.shape[-1]
        if cin != cout:
            ss, bs = _bn_fold(params["bns"])
            sc = jnp.einsum("nhwc,cd->nhwd", x, params["ws"], precision=hp) * ss + bs
        else:
            sc = x
        out = out + sc
    return jnp.transpose(out, (0, 3, 1, 2))


# ---------------------------------------------------------------------------
if __name__ == "__main__":
    # Block(in_planes=4, out_planes=8, expansion=4, stride=1) -> projection shortcut.
    in_planes, out_planes, expansion, stride = 4, 8, 4, 1
    batch, spatial = 2, 16

    key = jax.random.PRNGKey(0)
    kx, kp = jax.random.split(key)
    x = jax.random.normal(kx, (batch, in_planes, spatial, spatial), jnp.float32)
    params = make_block_params(kp, in_planes, out_planes, expansion, stride)

    out = jax.block_until_ready(block_forward(x, params, stride))
    assert out.shape == (batch, out_planes, spatial, spatial)

    ref = jax.block_until_ready(_reference_block(x, params, stride))
    err = float(jnp.max(jnp.abs(out - ref)))
    assert err < 2e-2, f"max abs error vs reference: {err}"
    print("KERNEL_OK")
</pallas_src>

<mosaic_0001>
module attributes {stable_mosaic.version = 11 : i64} {
  func.func @_block_kernel(%arg0: i32, %arg1: memref<1x256x4xf32, #tpu.memory_space<vmem>>, %arg2: memref<4x256xf32, #tpu.memory_space<vmem>>, %arg3: memref<1x128xf32, #tpu.memory_space<vmem>>, %arg4: memref<3x3x128xf32, #tpu.memory_space<vmem>>, %arg5: memref<1x1x128xf32, #tpu.memory_space<vmem>>, %arg6: memref<128x128xf32, #tpu.memory_space<vmem>>, %arg7: memref<1x128xf32, #tpu.memory_space<vmem>>, %arg8: memref<1x8x256xf32, #tpu.memory_space<vmem>>, %arg9: memref<18x24x128xf32, #tpu.memory_space<vmem>>) attributes {dimension_semantics = [#tpu.dimension_semantics<parallel>], iteration_bounds = array<i64: 2>, scalar_prefetch = 0 : i64, scratch_operands = 1 : i64, tpu.core_type = #tpu.core_type<tc>, window_params = [{transform_indices = @transform_0, window_bounds = array<i64: 1, 256, 4>}, {pipeline_mode = #tpu.pipeline_mode<synchronous>, transform_indices = @transform_1, window_bounds = array<i64: 4, 256>}, {pipeline_mode = #tpu.pipeline_mode<synchronous>, transform_indices = @transform_2, window_bounds = array<i64: 1, 128>}, {pipeline_mode = #tpu.pipeline_mode<synchronous>, transform_indices = @transform_3, window_bounds = array<i64: 3, 3, 128>}, {pipeline_mode = #tpu.pipeline_mode<synchronous>, transform_indices = @transform_4, window_bounds = array<i64: 1, 1, 128>}, {pipeline_mode = #tpu.pipeline_mode<synchronous>, transform_indices = @transform_5, window_bounds = array<i64: 128, 128>}, {pipeline_mode = #tpu.pipeline_mode<synchronous>, transform_indices = @transform_6, window_bounds = array<i64: 1, 128>}, {transform_indices = @transform_7, window_bounds = array<i64: 1, 8, 256>}]} {
    %c0 = arith.constant 0 : index
    %c0_0 = arith.constant 0 : index
    %c0_1 = arith.constant 0 : index
    %0 = vector.load %arg1[%c0, %c0_0, %c0_1] : memref<1x256x4xf32, #tpu.memory_space<vmem>>, vector<1x256x4xf32>
    %1 = vector.shape_cast %0 : vector<1x256x4xf32> to vector<256x4xf32>
    %c0_2 = arith.constant 0 : index
    %c0_3 = arith.constant 0 : index
    %2 = vector.load %arg2[%c0_2, %c0_3] : memref<4x256xf32, #tpu.memory_space<vmem>>, vector<4x256xf32>
    %cst = arith.constant dense<0.000000e+00> : vector<256x256xf32>
    %3 = tpu.matmul %1, %2, %cst {dimension_numbers = #tpu.dot_dimension_numbers<[1], [0], [0], [1], [0, 0, 1, 1], [], []>} : vector<256x4xf32>, vector<4x256xf32>, vector<256x256xf32> -> vector<256x256xf32>
    %4 = vector.extract_strided_slice %3 {offsets = [0, 0], sizes = [256, 128], strides = [1, 1]} : vector<256x256xf32> to vector<256x128xf32>
    %c0_4 = arith.constant 0 : index
    %c0_5 = arith.constant 0 : index
    %5 = vector.load %arg3[%c0_4, %c0_5] : memref<1x128xf32, #tpu.memory_space<vmem>>, vector<1x128xf32>
    %6 = vector.broadcast %5 : vector<1x128xf32> to vector<256x128xf32>
    %7 = arith.addf %4, %6 : vector<256x128xf32>
    %cst_6 = arith.constant 0.000000e+00 : f32
    %8 = vector.broadcast %cst_6 : f32 to vector<256x128xf32>
    %9 = arith.maximumf %7, %8 : vector<256x128xf32>
    %10 = vector.extract_strided_slice %3 {offsets = [0, 128], sizes = [256, 128], strides = [1, 1]} : vector<256x256xf32> to vector<256x128xf32>
    %cst_7 = arith.constant 0.000000e+00 : f32
    %11 = vector.broadcast %cst_7 : f32 to vector<1x24x128xf32>
    %c0_8 = arith.constant 0 : index
    %c0_9 = arith.constant 0 : index
    %c0_10 = arith.constant 0 : index
    %12 = vector.load %arg9[%c0_8, %c0_9, %c0_10] : memref<18x24x128xf32, #tpu.memory_space<vmem>>, vector<1x24x128xf32>
    tpu.vector_store %arg9[%c0_8, %c0_9, %c0_10], %11 {strides = array<i32>} : memref<18x24x128xf32, #tpu.memory_space<vmem>>, vector<1x24x128xf32>,
    %cst_11 = arith.constant 0.000000e+00 : f32
    %13 = vector.broadcast %cst_11 : f32 to vector<1x24x128xf32>
    %c17 = arith.constant 17 : index
    %c0_12 = arith.constant 0 : index
    %c0_13 = arith.constant 0 : index
    %14 = vector.load %arg9[%c17, %c0_12, %c0_13] : memref<18x24x128xf32, #tpu.memory_space<vmem>>, vector<1x24x128xf32>
    tpu.vector_store %arg9[%c17, %c0_12, %c0_13], %13 {strides = array<i32>} : memref<18x24x128xf32, #tpu.memory_space<vmem>>, vector<1x24x128xf32>,
    %cst_14 = arith.constant 0.000000e+00 : f32
    %15 = vector.broadcast %cst_14 : f32 to vector<16x1x128xf32>
    %c1 = arith.constant 1 : index
    %c0_15 = arith.constant 0 : index
    %c0_16 = arith.constant 0 : index
    %16 = vector.load %arg9[%c1, %c0_15, %c0_16] : memref<18x24x128xf32, #tpu.memory_space<vmem>>, vector<16x1x128xf32>
    tpu.vector_store %arg9[%c1, %c0_15, %c0_16], %15 {strides = array<i32>} : memref<18x24x128xf32, #tpu.memory_space<vmem>>, vector<16x1x128xf32>,
    %cst_17 = arith.constant 0.000000e+00 : f32
    %17 = vector.broadcast %cst_17 : f32 to vector<16x1x128xf32>
    %c1_18 = arith.constant 1 : index
    %c17_19 = arith.constant 17 : index
    %c0_20 = arith.constant 0 : index
    %18 = vector.load %arg9[%c1_18, %c17_19, %c0_20] : memref<18x24x128xf32, #tpu.memory_space<vmem>>, vector<16x1x128xf32>
    tpu.vector_store %arg9[%c1_18, %c17_19, %c0_20], %17 {strides = array<i32>} : memref<18x24x128xf32, #tpu.memory_space<vmem>>, vector<16x1x128xf32>,
    %19 = vector.shape_cast %9 : vector<256x128xf32> to vector<16x16x128xf32>
    %c1_21 = arith.constant 1 : index
    %c1_22 = arith.constant 1 : index
    %c0_23 = arith.constant 0 : index
    %20 = vector.load %arg9[%c1_21, %c1_22, %c0_23] : memref<18x24x128xf32, #tpu.memory_space<vmem>>, vector<16x16x128xf32>
    tpu.vector_store %arg9[%c1_21, %c1_22, %c0_23], %19 {strides = array<i32>} : memref<18x24x128xf32, #tpu.memory_space<vmem>>, vector<16x16x128xf32>,
    %c0_24 = arith.constant 0 : index
    %c0_25 = arith.constant 0 : index
    %c0_26 = arith.constant 0 : index
    %21 = vector.load %arg9[%c0_24, %c0_25, %c0_26] : memref<18x24x128xf32, #tpu.memory_space<vmem>>, vector<16x16x128xf32>
    %c0_27 = arith.constant 0 : index
    %c0_28 = arith.constant 0 : index
    %c0_29 = arith.constant 0 : index
    %22 = vector.load %arg4[%c0_27, %c0_28, %c0_29] : memref<3x3x128xf32, #tpu.memory_space<vmem>>, vector<1x1x128xf32>
    %23 = vector.broadcast %22 : vector<1x1x128xf32> to vector<16x16x128xf32>
    %24 = arith.mulf %21, %23 : vector<16x16x128xf32>
    %c0_30 = arith.constant 0 : index
    %c1_31 = arith.constant 1 : index
    %c0_32 = arith.constant 0 : index
    %25 = vector.load %arg9[%c0_30, %c1_31, %c0_32] : memref<18x24x128xf32, #tpu.memory_space<vmem>>, vector<16x16x128xf32>
    %c0_33 = arith.constant 0 : index
    %c1_34 = arith.constant 1 : index
    %c0_35 = arith.constant 0 : index
    %26 = vector.load %arg4[%c0_33, %c1_34, %c0_35] : memref<3x3x128xf32, #tpu.memory_space<vmem>>, vector<1x1x128xf32>
    %27 = vector.broadcast %26 : vector<1x1x128xf32> to vector<16x16x128xf32>
    %28 = arith.mulf %25, %27 : vector<16x16x128xf32>
    %29 = arith.addf %24, %28 : vector<16x16x128xf32>
    %c0_36 = arith.constant 0 : index
    %c2 = arith.constant 2 : index
    %c0_37 = arith.constant 0 : index
    %30 = vector.load %arg9[%c0_36, %c2, %c0_37] : memref<18x24x128xf32, #tpu.memory_space<vmem>>, vector<16x16x128xf32>
    %c0_38 = arith.constant 0 : index
    %c2_39 = arith.constant 2 : index
    %c0_40 = arith.constant 0 : index
    %31 = vector.load %arg4[%c0_38, %c2_39, %c0_40] : memref<3x3x128xf32, #tpu.memory_space<vmem>>, vector<1x1x128xf32>
    %32 = vector.broadcast %31 : vector<1x1x128xf32> to vector<16x16x128xf32>
    %33 = arith.mulf %30, %32 : vector<16x16x128xf32>
    %34 = arith.addf %29, %33 : vector<16x16x128xf32>
    %c1_41 = arith.constant 1 : index
    %c0_42 = arith.constant 0 : index
    %c0_43 = arith.constant 0 : index
    %35 = vector.load %arg9[%c1_41, %c0_42, %c0_43] : memref<18x24x128xf32, #tpu.memory_space<vmem>>, vector<16x16x128xf32>
    %c1_44 = arith.constant 1 : index
    %c0_45 = arith.constant 0 : index
    %c0_46 = arith.constant 0 : index
    %36 = vector.load %arg4[%c1_44, %c0_45, %c0_46] : memref<3x3x128xf32, #tpu.memory_space<vmem>>, vector<1x1x128xf32>
    %37 = vector.broadcast %36 : vector<1x1x128xf32> to vector<16x16x128xf32>
    %38 = arith.mulf %35, %37 : vector<16x16x128xf32>
    %39 = arith.addf %34, %38 : vector<16x16x128xf32>
    %c1_47 = arith.constant 1 : index
    %c1_48 = arith.constant 1 : index
    %c0_49 = arith.constant 0 : index
    %40 = vector.load %arg9[%c1_47, %c1_48, %c0_49] : memref<18x24x128xf32, #tpu.memory_space<vmem>>, vector<16x16x128xf32>
    %c1_50 = arith.constant 1 : index
    %c1_51 = arith.constant 1 : index
    %c0_52 = arith.constant 0 : index
    %41 = vector.load %arg4[%c1_50, %c1_51, %c0_52] : memref<3x3x128xf32, #tpu.memory_space<vmem>>, vector<1x1x128xf32>
    %42 = vector.broadcast %41 : vector<1x1x128xf32> to vector<16x16x128xf32>
    %43 = arith.mulf %40, %42 : vector<16x16x128xf32>
    %44 = arith.addf %39, %43 : vector<16x16x128xf32>
    %c1_53 = arith.constant 1 : index
    %c2_54 = arith.constant 2 : index
    %c0_55 = arith.constant 0 : index
    %45 = vector.load %arg9[%c1_53, %c2_54, %c0_55] : memref<18x24x128xf32, #tpu.memory_space<vmem>>, vector<16x16x128xf32>
    %c1_56 = arith.constant 1 : index
    %c2_57 = arith.constant 2 : index
    %c0_58 = arith.constant 0 : index
    %46 = vector.load %arg4[%c1_56, %c2_57, %c0_58] : memref<3x3x128xf32, #tpu.memory_space<vmem>>, vector<1x1x128xf32>
    %47 = vector.broadcast %46 : vector<1x1x128xf32> to vector<16x16x128xf32>
    %48 = arith.mulf %45, %47 : vector<16x16x128xf32>
    %49 = arith.addf %44, %48 : vector<16x16x128xf32>
    %c2_59 = arith.constant 2 : index
    %c0_60 = arith.constant 0 : index
    %c0_61 = arith.constant 0 : index
    %50 = vector.load %arg9[%c2_59, %c0_60, %c0_61] : memref<18x24x128xf32, #tpu.memory_space<vmem>>, vector<16x16x128xf32>
    %c2_62 = arith.constant 2 : index
    %c0_63 = arith.constant 0 : index
    %c0_64 = arith.constant 0 : index
    %51 = vector.load %arg4[%c2_62, %c0_63, %c0_64] : memref<3x3x128xf32, #tpu.memory_space<vmem>>, vector<1x1x128xf32>
    %52 = vector.broadcast %51 : vector<1x1x128xf32> to vector<16x16x128xf32>
    %53 = arith.mulf %50, %52 : vector<16x16x128xf32>
    %54 = arith.addf %49, %53 : vector<16x16x128xf32>
    %c2_65 = arith.constant 2 : index
    %c1_66 = arith.constant 1 : index
    %c0_67 = arith.constant 0 : index
    %55 = vector.load %arg9[%c2_65, %c1_66, %c0_67] : memref<18x24x128xf32, #tpu.memory_space<vmem>>, vector<16x16x128xf32>
    %c2_68 = arith.constant 2 : index
    %c1_69 = arith.constant 1 : index
    %c0_70 = arith.constant 0 : index
    %56 = vector.load %arg4[%c2_68, %c1_69, %c0_70] : memref<3x3x128xf32, #tpu.memory_space<vmem>>, vector<1x1x128xf32>
    %57 = vector.broadcast %56 : vector<1x1x128xf32> to vector<16x16x128xf32>
    %58 = arith.mulf %55, %57 : vector<16x16x128xf32>
    %59 = arith.addf %54, %58 : vector<16x16x128xf32>
    %c2_71 = arith.constant 2 : index
    %c2_72 = arith.constant 2 : index
    %c0_73 = arith.constant 0 : index
    %60 = vector.load %arg9[%c2_71, %c2_72, %c0_73] : memref<18x24x128xf32, #tpu.memory_space<vmem>>, vector<16x16x128xf32>
    %c2_74 = arith.constant 2 : index
    %c2_75 = arith.constant 2 : index
    %c0_76 = arith.constant 0 : index
    %61 = vector.load %arg4[%c2_74, %c2_75, %c0_76] : memref<3x3x128xf32, #tpu.memory_space<vmem>>, vector<1x1x128xf32>
    %62 = vector.broadcast %61 : vector<1x1x128xf32> to vector<16x16x128xf32>
    %63 = arith.mulf %60, %62 : vector<16x16x128xf32>
    %64 = arith.addf %59, %63 : vector<16x16x128xf32>
    %c0_77 = arith.constant 0 : index
    %c0_78 = arith.constant 0 : index
    %c0_79 = arith.constant 0 : index
    %65 = vector.load %arg5[%c0_77, %c0_78, %c0_79] : memref<1x1x128xf32, #tpu.memory_space<vmem>>, vector<1x1x128xf32>
    %66 = vector.broadcast %65 : vector<1x1x128xf32> to vector<16x16x128xf32>
    %67 = arith.addf %64, %66 : vector<16x16x128xf32>
    %cst_80 = arith.constant 0.000000e+00 : f32
    %68 = vector.broadcast %cst_80 : f32 to vector<16x16x128xf32>
    %69 = arith.maximumf %67, %68 : vector<16x16x128xf32>
    %70 = vector.shape_cast %69 : vector<16x16x128xf32> to vector<256x128xf32>
    %c0_81 = arith.constant 0 : index
    %c0_82 = arith.constant 0 : index
    %71 = vector.load %arg6[%c0_81, %c0_82] : memref<128x128xf32, #tpu.memory_space<vmem>>, vector<128x128xf32>
    %cst_83 = arith.constant dense<0.000000e+00> : vector<256x128xf32>
    %72 = tpu.matmul %70, %71, %cst_83 {dimension_numbers = #tpu.dot_dimension_numbers<[1], [0], [0], [1], [0, 0, 1, 1], [], []>} : vector<256x128xf32>, vector<128x128xf32>, vector<256x128xf32> -> vector<256x128xf32>
    %c0_84 = arith.constant 0 : index
    %c0_85 = arith.constant 0 : index
    %73 = vector.load %arg7[%c0_84, %c0_85] : memref<1x128xf32, #tpu.memory_space<vmem>>, vector<1x128xf32>
    %74 = vector.broadcast %73 : vector<1x128xf32> to vector<256x128xf32>
    %75 = arith.addf %72, %74 : vector<256x128xf32>
    %76 = arith.addf %75, %10 : vector<256x128xf32>
    %77 = tpu.transpose %76, [1, 0] : vector<256x128xf32> -> vector<128x256xf32>
    %78 = vector.extract_strided_slice %77 {offsets = [0, 0], sizes = [8, 256], strides = [1, 1]} : vector<128x256xf32> to vector<8x256xf32>
    %c0_86 = arith.constant 0 : index
    %c0_87 = arith.constant 0 : index
    %c0_88 = arith.constant 0 : index
    %79 = vector.load %arg8[%c0_86, %c0_87, %c0_88] : memref<1x8x256xf32, #tpu.memory_space<vmem>>, vector<1x8x256xf32>
    %80 = vector.shape_cast %79 : vector<1x8x256xf32> to vector<8x256xf32>
    %81 = vector.shape_cast %78 : vector<8x256xf32> to vector<1x8x256xf32>
    tpu.vector_store %arg8[%c0_86, %c0_87, %c0_88], %81 {strides = array<i32>} : memref<1x8x256xf32, #tpu.memory_space<vmem>>, vector<1x8x256xf32>,
    return
  }
  func.func @transform_0(%arg0: i32) -> (i32, i32, i32) {
    %c0_i32 = arith.constant 0 : i32
    %c0_i32_0 = arith.constant 0 : i32
    %c0_i32_1 = arith.constant 0 : i32
    return %arg0, %c0_i32, %c0_i32_0 : i32, i32, i32
  }
  func.func @transform_1(%arg0: i32) -> (i32, i32) {
    %c0_i32 = arith.constant 0 : i32
    %c0_i32_0 = arith.constant 0 : i32
    %c0_i32_1 = arith.constant 0 : i32
    return %c0_i32, %c0_i32_0 : i32, i32
  }
  func.func @transform_2(%arg0: i32) -> (i32, i32) {
    %c0_i32 = arith.constant 0 : i32
    %c0_i32_0 = arith.constant 0 : i32
    %c0_i32_1 = arith.constant 0 : i32
    return %c0_i32, %c0_i32_0 : i32, i32
  }
  func.func @transform_3(%arg0: i32) -> (i32, i32, i32) {
    %c0_i32 = arith.constant 0 : i32
    %c0_i32_0 = arith.constant 0 : i32
    %c0_i32_1 = arith.constant 0 : i32
    %c0_i32_2 = arith.constant 0 : i32
    return %c0_i32, %c0_i32_0, %c0_i32_1 : i32, i32, i32
  }
  func.func @transform_4(%arg0: i32) -> (i32, i32, i32) {
    %c0_i32 = arith.constant 0 : i32
    %c0_i32_0 = arith.constant 0 : i32
    %c0_i32_1 = arith.constant 0 : i32
    %c0_i32_2 = arith.constant 0 : i32
    return %c0_i32, %c0_i32_0, %c0_i32_1 : i32, i32, i32
  }
  func.func @transform_5(%arg0: i32) -> (i32, i32) {
    %c0_i32 = arith.constant 0 : i32
    %c0_i32_0 = arith.constant 0 : i32
    %c0_i32_1 = arith.constant 0 : i32
    return %c0_i32, %c0_i32_0 : i32, i32
  }
  func.func @transform_6(%arg0: i32) -> (i32, i32) {
    %c0_i32 = arith.constant 0 : i32
    %c0_i32_0 = arith.constant 0 : i32
    %c0_i32_1 = arith.constant 0 : i32
    return %c0_i32, %c0_i32_0 : i32, i32
  }
  func.func @transform_7(%arg0: i32) -> (i32, i32, i32) {
    %c0_i32 = arith.constant 0 : i32
    %c0_i32_0 = arith.constant 0 : i32
    %c0_i32_1 = arith.constant 0 : i32
    return %arg0, %c0_i32, %c0_i32_0 : i32, i32, i32
  }
}

</mosaic_0001>

<bundles_post_ra>
// kernel: tpu_custom_call.1
= control target key start
LH: loop header
LB: loop body
LE: loop exit
PB: predicated region body
PF: predicated region fallthrough
CT: control target
= control target key end

     0   :  { %12 = vsyncpa [#allocation4], 0  ;;  %s3800_s0 = inlined_call_operand.vmem [shape: f32[2,256,4], index: 0, kind: input, shape index: {}]   ;;  %s3801_s1 = inlined_call_operand.vmem [shape: f32[4,256], index: 1, kind: input, shape index: {}]   ;;  %s3802_s2 = inlined_call_operand.vmem [shape: f32[1,128], index: 2, kind: input, shape index: {}]   ;;  %s3803_s3 = inlined_call_operand.vmem [shape: f32[3,3,128], index: 3, kind: input, shape index: {}]   ;;  %s3804_s4 = inlined_call_operand.vmem [shape: f32[1,1,128], index: 4, kind: input, shape index: {}]   ;;  %s3805_s5 = inlined_call_operand.vmem [shape: f32[128,128], index: 5, kind: input, shape index: {}]   ;;  %s3806_s6 = inlined_call_operand.vmem [shape: f32[1,128], index: 6, kind: input, shape index: {}]   ;;  %s3807_s7 = inlined_call_operand.hbm [shape: f32[2,8,256], index: 7, kind: output, shape index: {}]  }
   0x1   :  { %14 = vsyncpa [#allocation4 + $0x1], 0  ;;  %s2540_s24 = smov 0   ;;  %s2542_s25 = smov 0  }
   0x2   :  { %s2544_s26 = smov 0   ;;  %s2546_s27 = smov 0  }
   0x3 LB: > { %s2561_s28 = sadd.s32 4294967295, %s2496_s27   ;;  %s2185_s29 = sadd.s32 4294967294, %s2496_s27   ;;  %s2496_s27 = sphi %s2546_s27, %s3849_s27   ;;  %s2492_s26 = sphi %s2544_s26, %s3848_s26   ;;  %s2488_s25 = sphi %s2542_s25, %s3847_s25   ;;  %s2484_s24 = sphi %s2540_s24, %s3846_s24  }
   0x4   : > { %s2565_s30 = sadd.s32 1, %s2496_s27   ;;  %s179_s8 = sadd.s32 1, %s2492_s26 }
   0x5   : > { %s176_s9 = ssub.s32 %s2496_s27, %s2565_s30  ;;  %p189_p0 = scmp.ne.s32.totalorder %s2492_s26, %s2488_s25 }
   0x6   : > { %p177_p1 = scmp.eq.s32.totalorder %s176_s9, 0  ;;  %p190_p2 = scmp.eq.s32.totalorder %s2561_s28, 1 }
   0x7   : > { %p195_p3 = scmp.ne.s32.totalorder %s2488_s25, %s2484_s24  ;;  %p196_p4 = scmp.eq.s32.totalorder %s2185_s29, 1 }
   0x8   : > { %s2576_s10 = scalar_select %p177_p1, %s2492_s26, %s179_s8  }
   0x9   : > { %p2578_p5 = por %p190_p2, %p189_p0  ;;  %p2582_p6 = por %p196_p4, %p195_p3 }
   0xa   : > { %p2188_p7 = scmp.ge.s32.totalorder %s2496_s27, 1  ;;  %p240_p8 = scmp.lt.s32.totalorder %s2496_s27, 3 }
   0xc   : > { %p241_p9 = pnand %p2188_p7, %p240_p8 }
   0xe   : > { %244 = sbr.rel (%p241_p9) target bundleno = 687 (0x2af), region = 48 }
  0x13   : > { %v309_v0 = vld [vmem:[%s3801_s1] sm:$0xff]  ;;  %vm409_vm0 = vcmask 1043456   ;;  %p272_p10 = scmp.lt.s32.totalorder %s2561_s28, 1  ;;  %v2498_v2 = vmov 0.0   ;;  %vm312_vm1 = vcmask 31744   ;;  %v1780_v29 = vld [vmem:[%s3805_s5 + $0x78] sm:$0xff] }
  0x14   : > { %v311_v1 = vcombine.high %v309_v0, %v309_v0  ;;  %478 = vmatprep.mubr.f32.mxu0 %v2498_v2  ;;  %742 = vst [vmem:[#allocation2] sm:$0xff] %v2498_v2  ;;  %743 = vst [vmem:[#allocation2 + $0x8] sm:$0xff] %v2498_v2  ;;  %622 = vmatprep.mubr.f32.mxu1 %v2498_v2  ;;  %v1779_v31 = vld [vmem:[%s3805_s5 + $0x70] sm:$0xff]  ;;  %v1778_v32 = vld [vmem:[%s3805_s5 + $0x68] sm:$0xff]  ;;  %s2250_s20 = sshll.u32 %s2561_s28, 8  ;;  %s2499_s8 = smov [#allocation3]  }
  0x15   : > { %744 = vst [vmem:[#allocation2 + $0x10] sm:$0xff] %v2498_v2  ;;  %746 = vst [vmem:[#allocation2 + $0x198] sm:$0xff] %v2498_v2  ;;  %s273_s15 = scalar_select %p272_p10, %s2561_s28, 1  ;;  %v1777_v34 = vld [vmem:[%s3805_s5 + $0x60] sm:$0xff]  ;;  %v1776_v35 = vld [vmem:[%s3805_s5 + $0x58] sm:$0xff] }
  0x16   : > { %747 = vst [vmem:[#allocation2 + $0x1a0] sm:$0xff] %v2498_v2  ;;  %748 = vst [vmem:[#allocation2 + $0x1a8] sm:$0xff] %v2498_v2  ;;  %2192 = vmatprep.subr.msk.mxu0 %vm409_vm0, %v311_v1  ;;  %2379 = vmatprep.subr.msk.mxu1 %vm409_vm0, %v311_v1  ;;  %v1775_v37 = vld [vmem:[%s3805_s5 + $0x50] sm:$0xff]  ;;  %v1774_v38 = vld [vmem:[%s3805_s5 + $0x48] sm:$0xff]  ;;  %s2124_s22 = scalar_lea.hbm %s3807_s7, %s2250_s20  ;;  %s2440_s9 = sshll.u32 %s2499_s8, 4  ;;  %s2441_s9 = int_to_ptr.vmem [resolvable:$false] %s2440_s9 }
  0x17   : > { %750 = vst [vmem:[#allocation2 + $0x18] sm:$0x1] %v2498_v2  ;;  %751 = vst [vmem:[#allocation2 + $0x30] sm:$0x1] %v2498_v2  ;;  %2193 = vmatpush1.msk.msra.mxu0 %vm409_vm0, %v309_v0  ;;  %s2249_s16 = sshll.u32 %s273_s15, 8  ;;  %2380 = vmatpush1.msk.msra.mxu1 %vm409_vm0, %v309_v0  ;;  %v1773_v40 = vld [vmem:[%s3805_s5 + $0x40] sm:$0xff] }
  0x18   : > { %752 = vst [vmem:[#allocation2 + $0x48] sm:$0x1] %v2498_v2  ;;  %753 = vst [vmem:[#allocation2 + $0x60] sm:$0x1] %v2498_v2  ;;  %s2642_s19 = scalar_lea.vmem %s3800_s0, %s2249_s16  ;;  %2299 = vmatprep.subr.mxu1 %v1780_v29  ;;  %v1772_v41 = vld [vmem:[%s3805_s5 + $0x38] sm:$0xff]  ;;  %v1771_v43 = vld [vmem:[%s3805_s5 + $0x30] sm:$0xff] }
  0x19   : > { %754 = vst [vmem:[#allocation2 + $0x78] sm:$0x1] %v2498_v2  ;;  %755 = vst [vmem:[#allocation2 + $0x90] sm:$0x1] %v2498_v2  ;;  %v277_v3 = vld [vmem:[%s2642_s19] sm:$0xff]  ;;  %v278_v4 = vld [vmem:[%s2642_s19 + $0x8] sm:$0xff] }
  0x1a   : > { %756 = vst [vmem:[#allocation2 + $0xa8] sm:$0x1] %v2498_v2  ;;  %757 = vst [vmem:[#allocation2 + $0xc0] sm:$0x1] %v2498_v2  ;;  %2194 = vmatmul.mubr.msk.f32.vlgmr.msra.gmra.mxu0 %vm312_vm1, %v277_v3  ;;  %v279_v5 = vld [vmem:[%s2642_s19 + $0x10] sm:$0xff]  ;;  %v301_v6 = vld [vmem:[%s2642_s19 + $0xc0] sm:$0xff] }
  0x1b   : > { %758 = vst [vmem:[#allocation2 + $0xd8] sm:$0x1] %v2498_v2  ;;  %759 = vst [vmem:[#allocation2 + $0xf0] sm:$0x1] %v2498_v2  ;;  %484 = vmatprep.mubr.f32.mxu0 %v2498_v2  ;;  %2218 = vmatmul.mubr.msk.f32.vlgmr.msra.gmra.mxu1 %vm312_vm1, %v301_v6  ;;  %v302_v7 = vld [vmem:[%s2642_s19 + $0xc8] sm:$0xff]  ;;  %v280_v8 = vld [vmem:[%s2642_s19 + $0x18] sm:$0xff] }
  0x1c   : > { %760 = vst [vmem:[#allocation2 + $0x108] sm:$0x1] %v2498_v2  ;;  %761 = vst [vmem:[#allocation2 + $0x120] sm:$0x1] %v2498_v2  ;;  %628 = vmatprep.mubr.f32.mxu1 %v2498_v2  ;;  %v303_v9 = vld [vmem:[%s2642_s19 + $0xd0] sm:$0xff]  ;;  %v281_v10 = vld [vmem:[%s2642_s19 + $0x20] sm:$0xff]  ;;  %2300 = vmatpush3.msra.mxu1 %v1780_v29 }
  0x1d   : > { %762 = vst [vmem:[#allocation2 + $0x138] sm:$0x1] %v2498_v2  ;;  %763 = vst [vmem:[#allocation2 + $0x150] sm:$0x1] %v2498_v2  ;;  %v304_v11 = vld [vmem:[%s2642_s19 + $0xd8] sm:$0xff]  ;;  %v282_v12 = vld [vmem:[%s2642_s19 + $0x28] sm:$0xff]  ;;  %2301 = vmatprep.subr.mxu1 %v1779_v31 }
  0x1e   : > { %764 = vst [vmem:[#allocation2 + $0x168] sm:$0x1] %v2498_v2  ;;  %765 = vst [vmem:[#allocation2 + $0x180] sm:$0x1] %v2498_v2  ;;  %2195 = vmatmul.mubr.msk.f32.gmra.mxu0 %vm312_vm1, %v278_v4  ;;  %v305_v13 = vld [vmem:[%s2642_s19 + $0xe0] sm:$0xff]  ;;  %v283_v14 = vld [vmem:[%s2642_s19 + $0x30] sm:$0xff]  ;;  %2302 = vmatpush3.msra.mxu1 %v1779_v31 }
  0x1f   : > { %766 = vst [vmem:[#allocation2 + $0x29] sm:$0x1] %v2498_v2  ;;  %767 = vst [vmem:[#allocation2 + $0x41] sm:$0x1] %v2498_v2  ;;  %490 = vmatprep.mubr.f32.mxu0 %v2498_v2  ;;  %2219 = vmatmul.mubr.msk.f32.gmra.mxu1 %vm312_vm1, %v302_v7  ;;  %v306_v15 = vld [vmem:[%s2642_s19 + $0xe8] sm:$0xff]  ;;  %v284_v16 = vld [vmem:[%s2642_s19 + $0x38] sm:$0xff] }
  0x20   : > { %768 = vst [vmem:[#allocation2 + $0x59] sm:$0x1] %v2498_v2  ;;  %769 = vst [vmem:[#allocation2 + $0x71] sm:$0x1] %v2498_v2  ;;  %634 = vmatprep.mubr.f32.mxu1 %v2498_v2  ;;  %v307_v17 = vld [vmem:[%s2642_s19 + $0xf0] sm:$0xff]  ;;  %v285_v18 = vld [vmem:[%s2642_s19 + $0x40] sm:$0xff]  ;;  %2303 = vmatprep.subr.mxu1 %v1778_v32 }
  0x21   : > { %770 = vst [vmem:[#allocation2 + $0x89] sm:$0x1] %v2498_v2  ;;  %771 = vst [vmem:[#allocation2 + $0xa1] sm:$0x1] %v2498_v2  ;;  %v308_v19 = vld [vmem:[%s2642_s19 + $0xf8] sm:$0xff]  ;;  %v286_v20 = vld [vmem:[%s2642_s19 + $0x48] sm:$0xff]  ;;  %2304 = vmatpush3.msra.mxu1 %v1778_v32 }
  0x22   : > { %772 = vst [vmem:[#allocation2 + $0xb9] sm:$0x1] %v2498_v2  ;;  %773 = vst [vmem:[#allocation2 + $0xd1] sm:$0x1] %v2498_v2  ;;  %2196 = vmatmul.mubr.msk.f32.gmra.mxu0 %vm312_vm1, %v279_v5  ;;  %v287_v21 = vld [vmem:[%s2642_s19 + $0x50] sm:$0xff]  ;;  %v288_v22 = vld [vmem:[%s2642_s19 + $0x58] sm:$0xff]  ;;  %2305 = vmatprep.subr.mxu1 %v1777_v34 }
  0x23   : > { %774 = vst [vmem:[#allocation2 + $0xe9] sm:$0x1] %v2498_v2  ;;  %775 = vst [vmem:[#allocation2 + $0x101] sm:$0x1] %v2498_v2  ;;  %496 = vmatprep.mubr.f32.mxu0 %v2498_v2  ;;  %2220 = vmatmul.mubr.msk.f32.gmra.mxu1 %vm312_vm1, %v303_v9  ;;  %v289_v23 = vld [vmem:[%s2642_s19 + $0x60] sm:$0xff]  ;;  %v290_v24 = vld [vmem:[%s2642_s19 + $0x68] sm:$0xff] }
  0x24   : > { %776 = vst [vmem:[#allocation2 + $0x119] sm:$0x1] %v2498_v2  ;;  %777 = vst [vmem:[#allocation2 + $0x131] sm:$0x1] %v2498_v2  ;;  %640 = vmatprep.mubr.f32.mxu1 %v2498_v2  ;;  %v291_v25 = vld [vmem:[%s2642_s19 + $0x70] sm:$0xff]  ;;  %v292_v26 = vld [vmem:[%s2642_s19 + $0x78] sm:$0xff]  ;;  %2306 = vmatpush3.msra.mxu1 %v1777_v34 }
  0x25   : > { %778 = vst [vmem:[#allocation2 + $0x149] sm:$0x1] %v2498_v2  ;;  %779 = vst [vmem:[#allocation2 + $0x161] sm:$0x1] %v2498_v2  ;;  %v293_v27 = vld [vmem:[%s2642_s19 + $0x80] sm:$0xff]  ;;  %v294_v28 = vld [vmem:[%s2642_s19 + $0x88] sm:$0xff]  ;;  %2307 = vmatprep.subr.mxu1 %v1776_v35 }
  0x26   : > { %780 = vst [vmem:[#allocation2 + $0x179] sm:$0x1] %v2498_v2  ;;  %781 = vst [vmem:[#allocation2 + $0x191] sm:$0x1] %v2498_v2  ;;  %2197 = vmatmul.mubr.msk.f32.gmra.mxu0 %vm312_vm1, %v280_v8  ;;  %v295_v30 = vld [vmem:[%s2642_s19 + $0x90] sm:$0xff]  ;;  %v296_v33 = vld [vmem:[%s2642_s19 + $0x98] sm:$0xff]  ;;  %2308 = vmatpush3.msra.mxu1 %v1776_v35 }
  0x27   : > { %502 = vmatprep.mubr.f32.mxu0 %v2498_v2  ;;  %2221 = vmatmul.mubr.msk.f32.gmra.mxu1 %vm312_vm1, %v304_v11  ;;  %v297_v36 = vld [vmem:[%s2642_s19 + $0xa0] sm:$0xff]  ;;  %v298_v39 = vld [vmem:[%s2642_s19 + $0xa8] sm:$0xff]  ;;  %v299_v42 = vld [vmem:[%s2642_s19 + $0xb0] sm:$0xff]  ;;  %s269_s15 = sand.u32 1, %s2488_s25   ;;  %s2442_s28 = scalar_lea.vmem %s2441_s9, 512 }
  0x28   : > { %646 = vmatprep.mubr.f32.mxu1 %v2498_v2  ;;  %2309 = vmatprep.subr.mxu1 %v1775_v37  ;;  %v1770_v44 = vld [vmem:[%s3805_s5 + $0x28] sm:$0xff]  ;;  %v300_v45 = vld [vmem:[%s2642_s19 + $0xb8] sm:$0xff]  ;;  %v1769_v46 = vld [vmem:[%s3805_s5 + $0x20] sm:$0xff]  ;;  %s2189_s16 = sshll.u32 %s269_s15, 4  ;;  %s2112_s23 = scalar_lea.sflag [#allocation4], %s269_s15 }
  0x29   : > { %2310 = vmatpush3.msra.mxu1 %v1775_v37  ;;  %v1768_v47 = vld [vmem:[%s3805_s5 + $0x18] sm:$0xff]  ;;  %v1767_v48 = vld [vmem:[%s3805_s5 + $0x10] sm:$0xff]  ;;  %v1766_v49 = vld [vmem:[%s3805_s5 + $0x8] sm:$0xff]  ;;  %s271_s17 = scalar_lea.vmem [#allocation3], %s2189_s16 }
  0x2a   : > { %2198 = vmatmul.mubr.msk.f32.gmra.mxu0 %vm312_vm1, %v281_v10  ;;  %2311 = vmatprep.subr.mxu1 %v1774_v38  ;;  %v1765_v50 = vld [vmem:[%s3805_s5] sm:$0xff]  ;;  %v884_v58 = vld [vmem:[#allocation2 + $0x9] sm:$0xff]  ;;  %s2126_s18 = sshll.u32 %s271_s17, 4  ;;  %s3762_s18 = int_to_ptr.vmem [resolvable:$true] %s2126_s18 }
  0x2b   : > { %508 = vmatprep.mubr.f32.mxu0 %v2498_v2  ;;  %2222 = vmatmul.mubr.msk.f32.gmra.mxu1 %vm312_vm1, %v305_v13  ;;  %v2789_v51 = vld [vmem:[%s3802_s2] ss:$0 sm:$0xff]  ;;  %v883_v54 = vld [vmem:[#allocation2 + $0x1] sm:$0xff]  ;;  %v985_v4 = vld [vmem:[#allocation2 + $0xa] sm:$0xff]  ;;  %s2436_s29 = scalar_lea.vmem %s3762_s18, 256  ;;  %p2443_p0 = scmp.lt.s32.totalorder %s3762_s18, %s2441_s9 }
  0x2c   : > { %652 = vmatprep.mubr.f32.mxu1 %v2498_v2  ;;  %2312 = vmatpush3.msra.mxu1 %v1774_v38  ;;  %v2794_v53 = vld [vmem:[%s3803_s3] ss:$0 sm:$0xff]  ;;  %v2802_v57 = vld [vmem:[%s3803_s3 + $0x1] ss:$0 sm:$0xff]  ;;  %v984_v63 = vld [vmem:[#allocation2 + $0x2] sm:$0xff]  ;;  %p2437_p11 = scmp.ne.s32.totalorder %s3762_s18, %s2436_s29  ;;  %p2444_p1 = scmp.lt.s32.totalorder %s2442_s28, %s2436_s29 }
  0x2d   : > { %2313 = vmatprep.subr.mxu1 %v1773_v40  ;;  %v851_v60 = vmul.f32 0.0, %v2794_v53  ;;  %v920_v61 = vmul.f32 %v2802_v57, %v883_v54  ;;  %v2809_v0 = vld [vmem:[%s3803_s3 + $0x2] ss:$0 sm:$0xff]  ;;  %v2852_v32 = vld [vmem:[%s3803_s3 + $0x6] ss:$0 sm:$0xff] }
  0x2e   : > { %2199 = vmatmul.mubr.msk.f32.gmra.mxu0 %vm312_vm1, %v282_v12  ;;  %2314 = vmatpush3.msra.mxu1 %v1773_v40  ;;  %v1021_v7 = vmul.f32 %v2809_v0, %v984_v63  ;;  %v1022_v13 = vmul.f32 %v2809_v0, %v985_v4  ;;  %p2438_p12 = pnand %p2437_p11, %p2578_p5  ;;  %p2445_p2 = por %p2444_p1, %p2443_p0 }
  0x2f   : > { %514 = vmatprep.mubr.f32.mxu0 %v2498_v2  ;;  %2223 = vmatmul.mubr.msk.f32.gmra.mxu1 %vm312_vm1, %v306_v15  ;;  %v952_v6 = vadd.f32 %v920_v61, %v851_v60 }
  0x30   : > { %658 = vmatprep.mubr.f32.mxu1 %v2498_v2  ;;  %2315 = vmatprep.subr.mxu1 %v1772_v41  ;;  %p2439_p13 = pneg %p2438_p12 }
  0x31   : > { %2316 = vmatpush3.msra.mxu1 %v1772_v41 }
  0x32   : > { %2200 = vmatmul.mubr.msk.f32.gmra.mxu0 %vm312_vm1, %v283_v14  ;;  %2317 = vmatprep.subr.mxu1 %v1771_v43  ;;  %p2446_p3 = pnand %p2445_p2, %p2439_p13 }
  0x33   : > { %520 = vmatprep.mubr.f32.mxu0 %v2498_v2  ;;  %2224 = vmatmul.mubr.msk.f32.gmra.mxu1 %vm312_vm1, %v307_v17 }
  0x34   : > { %664 = vmatprep.mubr.f32.mxu1 %v2498_v2  ;;  %2318 = vmatpush3.msra.mxu1 %v1771_v43 }
  0x35   : > { %2319 = vmatprep.subr.mxu1 %v1770_v44 }
  0x36   : > { %2201 = vmatmul.mubr.msk.f32.gmra.mxu0 %vm312_vm1, %v284_v16  ;;  %2320 = vmatpush3.msra.mxu1 %v1770_v44  ;;  %v2826_v16 = vld [vmem:[%s3803_s3 + $0x4] ss:$0 sm:$0xff] }
  0x37   : > { %526 = vmatprep.mubr.f32.mxu0 %v2498_v2  ;;  %2225 = vmatmul.mubr.msk.f32.gmra.mxu1 %vm312_vm1, %v308_v19  ;;  %v1053_v19 = vadd.f32 %v1021_v7, %v952_v6 }
  0x38   : > { %2321 = vmatprep.subr.mxu1 %v1769_v46 }
  0x39   : > { %2322 = vmatpush3.msra.mxu1 %v1769_v46 }
  0x3a   : > { %2202 = vmatmul.mubr.msk.f32.gmra.mxu0 %vm312_vm1, %v285_v18  ;;  %2323 = vmatprep.subr.mxu1 %v1768_v47 }
  0x3b   : > { %532 = vmatprep.mubr.f32.mxu0 %v2498_v2  ;;  %2324 = vmatpush3.msra.mxu1 %v1768_v47 }
  0x3c   : > { %2325 = vmatprep.subr.mxu1 %v1767_v48 }
  0x3d   : > { %2326 = vmatpush3.msra.mxu1 %v1767_v48 }
  0x3e   : > { %2203 = vmatmul.mubr.msk.f32.gmra.mxu0 %vm312_vm1, %v286_v20  ;;  %2327 = vmatprep.subr.mxu1 %v1766_v49  ;;  %v2833_v20 = vld [vmem:[%s3803_s3 + $0x5] ss:$0 sm:$0xff] }
  0x3f   : > { %538 = vmatprep.mubr.f32.mxu0 %v2498_v2  ;;  %2328 = vmatpush3.msra.mxu1 %v1766_v49 }
  0x40   : > { %2329 = vmatprep.subr.mxu1 %v1765_v50 }
  0x41   : > { %2330 = vmatpush3.msra.mxu1 %v1765_v50 }
  0x42   : > { %2204 = vmatmul.mubr.msk.f32.gmra.mxu0 %vm312_vm1, %v287_v21 }
  0x43   : > { %544 = vmatprep.mubr.f32.mxu0 %v2498_v2 }
  0x46   : > { %2205 = vmatmul.mubr.msk.f32.gmra.mxu0 %vm312_vm1, %v288_v22 }
  0x47   : > { %550 = vmatprep.mubr.f32.mxu0 %v2498_v2 }
  0x4a   : > { %2206 = vmatmul.mubr.msk.f32.gmra.mxu0 %vm312_vm1, %v289_v23 }
  0x4b   : > { %556 = vmatprep.mubr.f32.mxu0 %v2498_v2 }
  0x4e   : > { %2207 = vmatmul.mubr.msk.f32.gmra.mxu0 %vm312_vm1, %v290_v24 }
  0x4f   : > { %562 = vmatprep.mubr.f32.mxu0 %v2498_v2 }
  0x52   : > { %2208 = vmatmul.mubr.msk.f32.gmra.mxu0 %vm312_vm1, %v291_v25 }
  0x53   : > { %568 = vmatprep.mubr.f32.mxu0 %v2498_v2 }
  0x56   : > { %2209 = vmatmul.mubr.msk.f32.gmra.mxu0 %vm312_vm1, %v292_v26 }
  0x57   : > { %574 = vmatprep.mubr.f32.mxu0 %v2498_v2 }
  0x5a   : > { %2210 = vmatmul.mubr.msk.f32.gmra.mxu0 %vm312_vm1, %v293_v27  ;;  %v2842_v27 = vld [vmem:[%s3803_s3 + $0x9] ss:$0 sm:$0xff] }
  0x5b   : > { %580 = vmatprep.mubr.f32.mxu0 %v2498_v2 }
  0x5e   : > { %2211 = vmatmul.mubr.msk.f32.gmra.mxu0 %vm312_vm1, %v294_v28 }
  0x5f   : > { %586 = vmatprep.mubr.f32.mxu0 %v2498_v2 }
  0x62   : > { %2212 = vmatmul.mubr.msk.f32.gmra.mxu0 %vm312_vm1, %v295_v30 }
  0x63   : > { %592 = vmatprep.mubr.f32.mxu0 %v2498_v2 }
  0x66   : > { %2213 = vmatmul.mubr.msk.f32.gmra.mxu0 %vm312_vm1, %v296_v33 }
  0x67   : > { %598 = vmatprep.mubr.f32.mxu0 %v2498_v2 }
  0x6a   : > { %2214 = vmatmul.mubr.msk.f32.gmra.mxu0 %vm312_vm1, %v297_v36 }
  0x6b   : > { %604 = vmatprep.mubr.f32.mxu0 %v2498_v2 }
  0x6e   : > { %2215 = vmatmul.mubr.msk.f32.gmra.mxu0 %vm312_vm1, %v298_v39 }
  0x6f   : > { %610 = vmatprep.mubr.f32.mxu0 %v2498_v2 }
  0x72   : > { %2216 = vmatmul.mubr.msk.f32.gmra.mxu0 %vm312_vm1, %v299_v42 }
  0x73   : > { %616 = vmatprep.mubr.f32.mxu0 %v2498_v2  ;;  %v921_v2 = vmul.f32 %v2802_v57, %v884_v58  ;;  %v2873_v58 = vld [vmem:[%s3803_s3 + $0x8] ss:$0 sm:$0xff] }
  0x75   : > { %v953_v12 = vadd.f32 %v921_v2, %v851_v60 }
  0x76   : > { %2217 = vmatmul.mubr.msk.f32.gmra.mxu0 %vm312_vm1, %v300_v45 }
  0x77   : > { %v1054_v28 = vadd.f32 %v1022_v13, %v953_v12 }
  0xda   : > { %v480_v52 = vpop.f32.mrf.mxu0 }
  0xdb   : > { %v678_v55 = vadd.f32 %v2789_v51, %v480_v52  ;;  %v624_v8 = vpop.f32.mrf.mxu1 }
  0xdc   : > { %v2797_v56 = vpop.f32.mrf.mxu0  ;;  %v702_v10 = vadd.f32 %v2789_v51, %v624_v8 }
  0xdd   : > { %v710_v59 = vmax.f32 %v678_v55, 0.0  ;;  %v2819_v14 = vpop.f32.mrf.mxu1 }
  0xde   : > { %v486_v62 = vpop.f32.mrf.mxu0  ;;  %3810 = vst [vmem:[#allocation6_spill] sm:$0xff] %v2819_v14  ;;  %v2828_v17 = vmax.f32 %v702_v10, 0.0 }
  0xdf   : > { %782 = vst [vmem:[#allocation2 + $0x19] sm:$0xff] %v710_v59  ;;  %v679_v1 = vadd.f32 %v2789_v51, %v486_v62  ;;  %v630_v21 = vpop.f32.mrf.mxu1  ;;  %v1224_v31 = vmul.f32 %v2833_v20, %v710_v59  ;;  %v922_v34 = vmul.f32 %v2802_v57, %v710_v59 }
  0xe0   : > { %v2813_v3 = vpop.f32.mrf.mxu0  ;;  %806 = vst [vmem:[#allocation2 + $0x139] sm:$0xff] %v2828_v17  ;;  %v703_v24 = vadd.f32 %v2789_v51, %v630_v21  ;;  %v2863_v47 = vmul.f32 %v2842_v27, %v2828_v17  ;;  %v2889_v21 = vld [vmem:[%s3803_s3 + $0xa] ss:$0 sm:$0xff] }
  0xe1   : > { %v711_v5 = vmax.f32 %v679_v1, 0.0  ;;  %v2844_v29 = vpop.f32.mrf.mxu1 }
  0xe2   : > { %v492_v9 = vpop.f32.mrf.mxu0  ;;  %3811 = vst [vmem:[#allocation7_spill] sm:$0xff] %v2844_v29  ;;  %v735_v35 = vmax.f32 %v703_v24, 0.0 }
  0xe3   : > { %783 = vst [vmem:[#allocation2 + $0x21] sm:$0xff] %v711_v5  ;;  %v680_v11 = vadd.f32 %v2789_v51, %v492_v9  ;;  %v1225_v38 = vmul.f32 %v2833_v20, %v711_v5  ;;  %v923_v39 = vmul.f32 %v2802_v57, %v711_v5  ;;  %v636_v54 = vpop.f32.mrf.mxu1 }
  0xe4   : > { %v2821_v15 = vpop.f32.mrf.mxu0  ;;  %807 = vst [vmem:[#allocation2 + $0x141] sm:$0xff] %v735_v35  ;;  %v704_v62 = vadd.f32 %v2789_v51, %v636_v54 }
  0xe5   : > { %v712_v18 = vmax.f32 %v680_v11, 0.0 }
  0xe6   : > { %v498_v22 = vpop.f32.mrf.mxu0  ;;  %v1085_v23 = vld [vmem:[#allocation2 + $0x18] sm:$0xff] }
  0xe7   : > { %784 = vst [vmem:[#allocation2 + $0x31] sm:$0xff] %v712_v18  ;;  %v681_v25 = vadd.f32 %v2789_v51, %v498_v22  ;;  %v1123_v26 = vmul.f32 %v2826_v16, %v1085_v23  ;;  %v853_v33 = vmul.f32 %v2794_v53, %v1085_v23  ;;  %v1529_v42 = vmul.f32 %v2842_v27, %v712_v18 }
  0xe8   : > { %v2846_v30 = vpop.f32.mrf.mxu0  ;;  %v1226_v45 = vmul.f32 %v2833_v20, %v712_v18  ;;  %v924_v46 = vmul.f32 %v2802_v57, %v712_v18 }
  0xe9   : > { %v713_v36 = vmax.f32 %v681_v25, 0.0  ;;  %v1155_v37 = vadd.f32 %v1123_v26, %v1053_v19  ;;  %v954_v59 = vadd.f32 %v922_v34, %v853_v33 }
  0xea   : > { %v504_v40 = vpop.f32.mrf.mxu0  ;;  %v1288_v41 = vld [vmem:[#allocation2 + $0x1a] sm:$0xff]  ;;  %v1289_v44 = vld [vmem:[#allocation2 + $0x22] sm:$0xff] }
  0xeb   : > { %v1086_v43 = vld [vmem:[#allocation2 + $0x20] sm:$0xff]  ;;  %785 = vst [vmem:[#allocation2 + $0x39] sm:$0xff] %v713_v36  ;;  %v682_v48 = vadd.f32 %v2789_v51, %v504_v40  ;;  %v1256_v49 = vadd.f32 %v1224_v31, %v1155_v37  ;;  %v1325_v50 = vmul.f32 %v2852_v32, %v1288_v41  ;;  %v1023_v60 = vmul.f32 %v2809_v0, %v1288_v41 }
  0xec   : > { %v1124_v52 = vmul.f32 %v2826_v16, %v1086_v43  ;;  %v2868_v55 = vpop.f32.mrf.mxu0  ;;  %v854_v61 = vmul.f32 %v2794_v53, %v1086_v43  ;;  %v1326_v2 = vmul.f32 %v2852_v32, %v1289_v44  ;;  %v1530_v4 = vmul.f32 %v2842_v27, %v713_v36 }
  0xed   : > { %v714_v63 = vmax.f32 %v682_v48, 0.0  ;;  %v1357_v6 = vadd.f32 %v1325_v50, %v1256_v49  ;;  %v1055_v8 = vadd.f32 %v1023_v60, %v954_v59  ;;  %v1024_v10 = vmul.f32 %v2809_v0, %v1289_v44 }
  0xee   : > { %v1156_v1 = vadd.f32 %v1124_v52, %v1054_v28  ;;  %v510_v5 = vpop.f32.mrf.mxu0  ;;  %v1390_v7 = vld [vmem:[#allocation2 + $0x30] sm:$0xff]  ;;  %v955_v9 = vadd.f32 %v923_v39, %v854_v61  ;;  %v1227_v23 = vmul.f32 %v2833_v20, %v713_v36  ;;  %v2897_v25 = vmul.f32 %v2802_v57, %v713_v36  ;;  %v2911_v52 = vld [vmem:[%s3804_s4] ss:$0 sm:$0xff] }
  0xef   : > { %786 = vst [vmem:[#allocation2 + $0x49] sm:$0xff] %v714_v63  ;;  %v683_v11 = vadd.f32 %v2789_v51, %v510_v5  ;;  %v1428_v12 = vmul.f32 %v2873_v58, %v1390_v7  ;;  %v1125_v18 = vmul.f32 %v2826_v16, %v1390_v7  ;;  %v2892_v22 = vmul.f32 %v2842_v27, %v714_v63 }
  0xf0   : > { %v1257_v13 = vadd.f32 %v1225_v38, %v1156_v1  ;;  %v2884_v19 = vpop.f32.mrf.mxu0  ;;  %v855_v24 = vmul.f32 %v2794_v53, %v1390_v7  ;;  %v1056_v33 = vadd.f32 %v1024_v10, %v955_v9  ;;  %v1228_v41 = vmul.f32 %v2833_v20, %v714_v63 }
  0xf1   : > { %v2899_v26 = vmax.f32 %v683_v11, 0.0  ;;  %v1460_v28 = vadd.f32 %v1428_v12, %v1357_v6  ;;  %v1157_v31 = vadd.f32 %v1125_v18, %v1055_v8  ;;  %v736_v43 = vmax.f32 %v704_v62, 0.0 }
  0xf2   : > { %v516_v34 = vpop.f32.mrf.mxu0  ;;  %v1593_v35 = vld [vmem:[#allocation2 + $0x32] sm:$0xff]  ;;  %v1358_v37 = vadd.f32 %v1326_v2, %v1257_v13  ;;  %v1594_v39 = vld [vmem:[#allocation2 + $0x3a] sm:$0xff]  ;;  %v956_v40 = vadd.f32 %v924_v46, %v855_v24  ;;  %v2916_v60 = vmul.f32 %v2802_v57, %v714_v63 }
  0xf3   : > { %v1391_v38 = vld [vmem:[#allocation2 + $0x38] sm:$0xff]  ;;  %787 = vst [vmem:[#allocation2 + $0x51] sm:$0xff] %v2899_v26  ;;  %v684_v44 = vadd.f32 %v2789_v51, %v516_v34  ;;  %v1561_v36 = vadd.f32 %v1529_v42, %v1460_v28  ;;  %v1630_v48 = vmul.f32 %v2889_v21, %v1593_v35  ;;  %v1258_v46 = vadd.f32 %v1226_v45, %v1157_v31 }
  0xf4   : > { %v1429_v49 = vmul.f32 %v2873_v58, %v1391_v38  ;;  %v2906_v50 = vpop.f32.mrf.mxu0  ;;  %v1327_v54 = vmul.f32 %v2852_v32, %v1593_v35  ;;  %v1126_v59 = vmul.f32 %v2826_v16, %v1391_v38  ;;  %808 = vst [vmem:[#allocation2 + $0x151] sm:$0xff] %v736_v43  ;;  %v1631_v1 = vmul.f32 %v2889_v21, %v1594_v39 }
  0xf5   : > { %v2918_v42 = vmax.f32 %v684_v44, 0.0  ;;  %v1662_v61 = vadd.f32 %v1630_v48, %v1561_v36  ;;  %v1328_v45 = vmul.f32 %v2852_v32, %v1594_v39  ;;  %v1025_v8 = vmul.f32 %v2809_v0, %v1593_v35 }
  0xf6   : > { %v1461_v62 = vadd.f32 %v1429_v49, %v1358_v37  ;;  %v522_v2 = vpop.f32.mrf.mxu0  ;;  %v1359_v5 = vadd.f32 %v1327_v54, %v1258_v46  ;;  %v1392_v6 = vld [vmem:[#allocation2 + $0x48] sm:$0xff]  ;;  %v1158_v7 = vadd.f32 %v1126_v59, %v1056_v33  ;;  %v1532_v18 = vmul.f32 %v2842_v27, %v2899_v26 }
  0xf7   : > { %788 = vst [vmem:[#allocation2 + $0x61] sm:$0xff] %v2918_v42  ;;  %v685_v63 = vadd.f32 %v2789_v51, %v522_v2  ;;  %v1701_v9 = vadd.f32 %v2911_v52, %v1662_v61  ;;  %v1430_v11 = vmul.f32 %v2873_v58, %v1392_v6  ;;  %v1057_v24 = vadd.f32 %v1025_v8, %v956_v40 }
  0xf8   : > { %v1562_v10 = vadd.f32 %v1530_v4, %v1461_v62  ;;  %v2927_v12 = vpop.f32.mrf.mxu0  ;;  %v1259_v13 = vadd.f32 %v1227_v23, %v1158_v7  ;;  %v1127_v28 = vmul.f32 %v2826_v16, %v1392_v6  ;;  %v1533_v23 = vmul.f32 %v2842_v27, %v2918_v42 }
  0xf9   : > { %v2932_v31 = vmax.f32 %v685_v63, 0.0  ;;  %v1733_v33 = vmax.f32 %v1701_v9, 0.0  ;;  %v1462_v35 = vadd.f32 %v1430_v11, %v1359_v5  ;;  %v856_v48 = vmul.f32 %v2794_v53, %v1391_v38 }
  0xfa   : > { %v1663_v34 = vadd.f32 %v1631_v1, %v1562_v10  ;;  %v528_v37 = vpop.f32.mrf.mxu0  ;;  %v1595_v43 = vld [vmem:[#allocation2 + $0x4a] sm:$0xff]  ;;  %v1360_v44 = vadd.f32 %v1328_v45, %v1259_v13  ;;  %v1159_v36 = vadd.f32 %v1127_v28, %v1057_v24  ;;  %v2944_v59 = vld [vmem:[#allocation2 + $0x52] sm:$0xff]  ;;  %v1026_v2 = vmul.f32 %v2809_v0, %v1594_v39 }
  0xfb   : > { %v2934_v4 = vld [vmem:[#allocation2 + $0x50] sm:$0xff]  ;;  %789 = vst [vmem:[#allocation2 + $0x69] sm:$0xff] %v2932_v31  ;;  %v686_v40 = vadd.f32 %v2789_v51, %v528_v37  ;;  %2331 = vmatprep.mubr.f32.mxu1 %v1733_v33  ;;  %v1563_v46 = vadd.f32 %v2892_v22, %v1462_v35  ;;  %v1632_v54 = vmul.f32 %v2889_v21, %v1595_v43 }
  0xfc   : > { %v1702_v49 = vadd.f32 %v2911_v52, %v1663_v34  ;;  %v2946_v61 = vpop.f32.mrf.mxu0  ;;  %v1431_v62 = vmul.f32 %v2873_v58, %v2934_v4  ;;  %v1260_v1 = vadd.f32 %v1228_v41, %v1159_v36  ;;  %v1329_v38 = vmul.f32 %v2852_v32, %v1595_v43 }
  0xfd   : > { %v2952_v5 = vmax.f32 %v686_v40, 0.0  ;;  %v1664_v45 = vadd.f32 %v1632_v54, %v1563_v46  ;;  %v957_v22 = vadd.f32 %v2897_v25, %v856_v48  ;;  %v1633_v9 = vmul.f32 %v2889_v21, %v2944_v59 }
  0xfe   : > { %v1734_v7 = vmax.f32 %v1702_v49, 0.0  ;;  %v534_v8 = vpop.f32.mrf.mxu0  ;;  %v1463_v63 = vadd.f32 %v1431_v62, %v1360_v44  ;;  %v1361_v10 = vadd.f32 %v1329_v38, %v1260_v1  ;;  %v2957_v11 = vld [vmem:[#allocation2 + $0x60] sm:$0xff]  ;;  %v1128_v41 = vmul.f32 %v2826_v16, %v2934_v4  ;;  %v2973_v44 = vpop.f32.mrf.mxu1 }
  0xff   : > { %790 = vst [vmem:[#allocation2 + $0x79] sm:$0xff] %v2952_v5  ;;  %v687_v39 = vadd.f32 %v2789_v51, %v534_v8  ;;  %v1703_v13 = vadd.f32 %v2911_v52, %v1664_v45  ;;  %v1432_v25 = vmul.f32 %v2873_v58, %v2957_v11  ;;  %v1058_v24 = vadd.f32 %v1026_v2, %v957_v22 }
 0x100   : > { %2332 = vmatmul.mubr.f32.vlgmr.msra.gmra.mxu1 %v1734_v7  ;;  %v2966_v28 = vpop.f32.mrf.mxu0  ;;  %v1564_v33 = vadd.f32 %v1532_v18, %v1463_v63  ;;  %v1229_v34 = vmul.f32 %v2833_v20, %v2899_v26  ;;  %v1330_v35 = vmul.f32 %v2852_v32, %v2944_v59  ;;  %v857_v37 = vmul.f32 %v2794_v53, %v1392_v6 }
 0x101   : > { %3812 = vst [vmem:[#allocation8_spill] sm:$0xff] %v2973_v44  ;;  %v2975_v36 = vmax.f32 %v687_v39, 0.0  ;;  %v1735_v48 = vmax.f32 %v1703_v13, 0.0  ;;  %v1464_v40 = vadd.f32 %v1432_v25, %v1361_v10  ;;  %v1160_v49 = vadd.f32 %v1128_v41, %v1058_v24 }
 0x102   : > { %v540_v46 = vpop.f32.mrf.mxu0  ;;  %v1665_v54 = vadd.f32 %v1633_v9, %v1564_v33  ;;  %v2977_v62 = vld [vmem:[#allocation2 + $0x62] sm:$0xff]  ;;  %v958_v1 = vadd.f32 %v2916_v60, %v857_v37  ;;  %v1027_v38 = vmul.f32 %v2809_v0, %v1595_v43  ;;  %v1129_v6 = vmul.f32 %v2826_v16, %v2957_v11  ;;  %v642_v9 = vpop.f32.mrf.mxu1  ;;  %v3003_v33 = vld [vmem:[#allocation2 + $0x6a] sm:$0xff] }
 0x103   : > { %v2979_v18 = vld [vmem:[#allocation2 + $0x68] sm:$0xff]  ;;  %791 = vst [vmem:[#allocation2 + $0x81] sm:$0xff] %v2975_v36  ;;  %v688_v2 = vadd.f32 %v2789_v51, %v540_v46  ;;  %2334 = vmatprep.mubr.f32.mxu1 %v1735_v48  ;;  %v1565_v7 = vadd.f32 %v1533_v23, %v1464_v40  ;;  %v1634_v45 = vmul.f32 %v2889_v21, %v2977_v62 }
 0x104   : > { %v1261_v22 = vadd.f32 %v1229_v34, %v1160_v49  ;;  %v2989_v8 = vpop.f32.mrf.mxu0  ;;  %v1704_v63 = vadd.f32 %v2911_v52, %v1665_v54  ;;  %v1433_v60 = vmul.f32 %v2873_v58, %v2979_v18  ;;  %v1059_v43 = vadd.f32 %v1027_v38, %v958_v1 }
 0x105   : > { %3813 = vst [vmem:[#allocation9_spill] sm:$0xff] %v2989_v8  ;;  %v2996_v10 = vmul.f32 %v2833_v20, %v2828_v17  ;;  %v2998_v41 = vmax.f32 %v688_v2, 0.0  ;;  %v1666_v23 = vadd.f32 %v1634_v45, %v1565_v7  ;;  %v3001_v13 = vadd.f32 %v2789_v51, %v642_v9 }
 0x106   : > { %v1362_v39 = vadd.f32 %v1330_v35, %v1261_v22  ;;  %v546_v25 = vpop.f32.mrf.mxu0  ;;  %v1736_v24 = vmax.f32 %v1704_v63, 0.0  ;;  %v1161_v34 = vadd.f32 %v1129_v6, %v1059_v43  ;;  %v1230_v37 = vmul.f32 %v2833_v20, %v2918_v42  ;;  %v3009_v40 = vld [vmem:[#allocation2 + $0x78] sm:$0xff] }
 0x107   : > { %v1331_v48 = vmul.f32 %v2852_v32, %v2977_v62  ;;  %792 = vst [vmem:[#allocation2 + $0x91] sm:$0xff] %v2998_v41  ;;  %v689_v35 = vadd.f32 %v2789_v51, %v546_v25  ;;  %v1705_v49 = vadd.f32 %v2911_v52, %v1666_v23  ;;  %v1534_v54 = vmul.f32 %v2842_v27, %v2932_v31 }
 0x108   : > { %v1465_v46 = vadd.f32 %v1433_v60, %v1362_v39  ;;  %2335 = vmatmul.mubr.f32.gmra.mxu1 %v1736_v24  ;;  %v3016_v1 = vpop.f32.mrf.mxu0  ;;  %v1262_v38 = vadd.f32 %v1230_v37, %v1161_v34  ;;  %v1434_v6 = vmul.f32 %v2873_v58, %v3009_v40  ;;  %v858_v2 = vmul.f32 %v2794_v53, %v2934_v4 }
 0x109   : > { %3814 = vst [vmem:[#allocation10_spill] sm:$0xff] %v3016_v1  ;;  %v927_v7 = vmul.f32 %v2802_v57, %v2899_v26  ;;  %v3024_v45 = vmax.f32 %v689_v35, 0.0  ;;  %v1737_v22 = vmax.f32 %v1705_v49, 0.0  ;;  %v1635_v60 = vmul.f32 %v2889_v21, %v3003_v33 }
 0x10a   : > { %v1566_v63 = vadd.f32 %v1534_v54, %v1465_v46  ;;  %v552_v43 = vpop.f32.mrf.mxu0  ;;  %v1363_v9 = vadd.f32 %v1331_v48, %v1262_v38  ;;  %v3028_v23 = vld [vmem:[#allocation2 + $0x7a] sm:$0xff]  ;;  %v1028_v25 = vmul.f32 %v2809_v0, %v2944_v59  ;;  %v1130_v4 = vmul.f32 %v2826_v16, %v2979_v18 }
 0x10b   : > { %v959_v39 = vadd.f32 %v927_v7, %v858_v2  ;;  %793 = vst [vmem:[#allocation2 + $0x99] sm:$0xff] %v3024_v45  ;;  %v690_v26 = vadd.f32 %v2789_v51, %v552_v43  ;;  %2337 = vmatprep.mubr.f32.mxu1 %v1737_v22  ;;  %v1535_v34 = vmul.f32 %v2842_v27, %v2952_v5  ;;  %v3040_v48 = vld [vmem:[#allocation2 + $0x80] sm:$0xff]  ;;  %v3270_v8 = vmax.f32 %v3001_v13, 0.0 }
 0x10c   : > { %v1667_v24 = vadd.f32 %v1635_v60, %v1566_v63  ;;  %v1231_v37 = vmul.f32 %v2833_v20, %v2932_v31  ;;  %v3042_v35 = vpop.f32.mrf.mxu0  ;;  %v1466_v59 = vadd.f32 %v1434_v6, %v1363_v9  ;;  %v1636_v49 = vmul.f32 %v2889_v21, %v3028_v23  ;;  %v3051_v7 = vld [vmem:[#allocation2 + $0x82] sm:$0xff] }
 0x10d   : > { %3815 = vst [vmem:[#allocation11_spill] sm:$0xff] %v3042_v35  ;;  %v1060_v46 = vadd.f32 %v1028_v25, %v959_v39  ;;  %v1332_v54 = vmul.f32 %v2852_v32, %v3003_v33  ;;  %v3048_v38 = vmax.f32 %v690_v26, 0.0  ;;  %v859_v22 = vmul.f32 %v2794_v53, %v2957_v11  ;;  %809 = vst [vmem:[#allocation2 + $0x159] sm:$0xff] %v3270_v8 }
 0x10e   : > { %v1706_v2 = vadd.f32 %v2911_v52, %v1667_v24  ;;  %v928_v63 = vmul.f32 %v2802_v57, %v2918_v42  ;;  %v558_v6 = vpop.f32.mrf.mxu0  ;;  %v1567_v60 = vadd.f32 %v1535_v34, %v1466_v59  ;;  %v1435_v9 = vmul.f32 %v2873_v58, %v3040_v48 }
 0x10f   : > { %v1162_v43 = vadd.f32 %v1130_v4, %v1060_v46  ;;  %v1029_v39 = vmul.f32 %v2809_v0, %v2977_v62  ;;  %794 = vst [vmem:[#allocation2 + $0xa9] sm:$0xff] %v3048_v38  ;;  %v691_v25 = vadd.f32 %v2789_v51, %v558_v6  ;;  %v1131_v11 = vmul.f32 %v2826_v16, %v3009_v40  ;;  %v3071_v62 = vld [vmem:[#allocation2 + $0x90] sm:$0xff] }
 0x110   : > { %v1738_v26 = vmax.f32 %v1706_v2, 0.0  ;;  %v960_v24 = vadd.f32 %v928_v63, %v859_v22  ;;  %v3065_v44 = vpop.f32.mrf.mxu0  ;;  %v1668_v42 = vadd.f32 %v1636_v49, %v1567_v60  ;;  %v1536_v4 = vmul.f32 %v2842_v27, %v2975_v36 }
 0x111   : > { %3816 = vst [vmem:[#allocation12_spill] sm:$0xff] %v3065_v44  ;;  %v1263_v34 = vadd.f32 %v1231_v37, %v1162_v43  ;;  %v1637_v59 = vmul.f32 %v2889_v21, %v3051_v7  ;;  %v3073_v46 = vmax.f32 %v691_v25, 0.0  ;;  %v1232_v22 = vmul.f32 %v2833_v20, %v2952_v5 }
 0x112   : > { %2338 = vmatmul.mubr.f32.gmra.mxu1 %v1738_v26  ;;  %v1061_v2 = vadd.f32 %v1029_v39, %v960_v24  ;;  %v860_v63 = vmul.f32 %v2794_v53, %v2979_v18  ;;  %v564_v49 = vpop.f32.mrf.mxu0  ;;  %v1707_v37 = vadd.f32 %v2911_v52, %v1668_v42  ;;  %v1333_v60 = vmul.f32 %v2852_v32, %v3028_v23  ;;  %v3082_v43 = vld [vmem:[#allocation2 + $0x92] sm:$0xff] }
 0x113   : > { %v1364_v6 = vadd.f32 %v1332_v54, %v1263_v34  ;;  %v929_v25 = vmul.f32 %v2802_v57, %v2932_v31  ;;  %795 = vst [vmem:[#allocation2 + $0xb1] sm:$0xff] %v3073_v46  ;;  %v692_v39 = vadd.f32 %v2789_v51, %v564_v49  ;;  %v1436_v18 = vmul.f32 %v2873_v58, %v3071_v62  ;;  %v3102_v49 = vld [vmem:[#allocation2 + $0x98] sm:$0xff] }
 0x114   : > { %v1163_v26 = vadd.f32 %v1131_v11, %v1061_v2  ;;  %v1030_v24 = vmul.f32 %v2809_v0, %v3003_v33  ;;  %v1739_v54 = vmax.f32 %v1707_v37, 0.0  ;;  %v3092_v42 = vpop.f32.mrf.mxu0  ;;  %v1132_v14 = vmul.f32 %v2826_v16, %v3040_v48 }
 0x115   : > { %3817 = vst [vmem:[#allocation13_spill] sm:$0xff] %v3092_v42  ;;  %v1467_v34 = vadd.f32 %v1435_v9, %v1364_v6  ;;  %v961_v29 = vadd.f32 %v929_v25, %v860_v63  ;;  %v3096_v31 = vmax.f32 %v692_v39, 0.0  ;;  %v1537_v11 = vmul.f32 %v2842_v27, %v2998_v41  ;;  %v3110_v25 = vld [vmem:[#allocation2 + $0x9a] sm:$0xff] }
 0x116   : > { %v1264_v44 = vadd.f32 %v1232_v22, %v1163_v26  ;;  %v1638_v2 = vmul.f32 %v2889_v21, %v3082_v43  ;;  %2340 = vmatprep.mubr.f32.mxu1 %v1739_v54  ;;  %v570_v33 = vpop.f32.mrf.mxu0  ;;  %v1233_v9 = vmul.f32 %v2833_v20, %v2975_v36  ;;  %v1334_v63 = vmul.f32 %v2852_v32, %v3051_v7 }
 0x117   : > { %v1568_v37 = vadd.f32 %v1536_v4, %v1467_v34  ;;  %v1062_v42 = vadd.f32 %v1030_v24, %v961_v29  ;;  %796 = vst [vmem:[#allocation2 + $0xc1] sm:$0xff] %v3096_v31  ;;  %v693_v22 = vadd.f32 %v2789_v51, %v570_v33  ;;  %v861_v39 = vmul.f32 %v2794_v53, %v3009_v40 }
 0x118   : > { %v1365_v6 = vadd.f32 %v1333_v60, %v1264_v44  ;;  %v930_v4 = vmul.f32 %v2802_v57, %v2952_v5  ;;  %v3116_v26 = vpop.f32.mrf.mxu0  ;;  %v1437_v54 = vmul.f32 %v2873_v58, %v3102_v49  ;;  %v1031_v34 = vmul.f32 %v2809_v0, %v3028_v23 }
 0x119   : > { %v1669_v29 = vadd.f32 %v1637_v59, %v1568_v37  ;;  %3818 = vst [vmem:[#allocation14_spill] sm:$0xff] %v3116_v26  ;;  %v1164_v24 = vadd.f32 %v1132_v14, %v1062_v42  ;;  %v3122_v33 = vmax.f32 %v693_v22, 0.0  ;;  %v1133_v40 = vmul.f32 %v2826_v16, %v3071_v62 }
 0x11a   : > { %v1468_v44 = vadd.f32 %v1436_v18, %v1365_v6  ;;  %v962_v60 = vadd.f32 %v930_v4, %v861_v39  ;;  %v576_v5 = vpop.f32.mrf.mxu0  ;;  %v1538_v14 = vmul.f32 %v2842_v27, %v3024_v45  ;;  %v1639_v42 = vmul.f32 %v2889_v21, %v3110_v25  ;;  %v3135_v6 = vld [vmem:[#allocation2 + $0xa8] sm:$0xff] }
 0x11b   : > { %v1708_v35 = vadd.f32 %v2911_v52, %v1669_v29  ;;  %v1265_v59 = vadd.f32 %v1233_v9, %v1164_v24  ;;  %797 = vst [vmem:[#allocation2 + $0xc9] sm:$0xff] %v3122_v33  ;;  %v694_v23 = vadd.f32 %v2789_v51, %v576_v5  ;;  %v1234_v22 = vmul.f32 %v2833_v20, %v2998_v41 }
 0x11c   : > { %v1569_v37 = vadd.f32 %v1537_v11, %v1468_v44  ;;  %v1063_v18 = vadd.f32 %v1031_v34, %v962_v60  ;;  %v3137_v4 = vpop.f32.mrf.mxu0  ;;  %v1335_v29 = vmul.f32 %v2852_v32, %v3082_v43  ;;  %v862_v24 = vmul.f32 %v2794_v53, %v3040_v48  ;;  %v3145_v34 = vld [vmem:[#allocation2 + $0xaa] sm:$0xff] }
 0x11d   : > { %v1740_v39 = vmax.f32 %v1708_v35, 0.0  ;;  %3819 = vst [vmem:[#allocation15_spill] sm:$0xff] %v3137_v4  ;;  %v1366_v9 = vadd.f32 %v1334_v63, %v1265_v59  ;;  %v3143_v26 = vmax.f32 %v694_v23, 0.0  ;;  %v931_v44 = vmul.f32 %v2802_v57, %v2975_v36 }
 0x11e   : > { %v1670_v5 = vadd.f32 %v1638_v2, %v1569_v37  ;;  %v1165_v11 = vadd.f32 %v1133_v40, %v1063_v18  ;;  %v582_v35 = vpop.f32.mrf.mxu0  ;;  %v1438_v63 = vmul.f32 %v2873_v58, %v3135_v6  ;;  %v1032_v59 = vmul.f32 %v2809_v0, %v3051_v7 }
 0x11f   : > { %2341 = vmatmul.mubr.f32.gmra.mxu1 %v1740_v39  ;;  %v1469_v60 = vadd.f32 %v1437_v54, %v1366_v9  ;;  %v1134_v48 = vmul.f32 %v2826_v16, %v3102_v49  ;;  %798 = vst [vmem:[#allocation2 + $0xd9] sm:$0xff] %v3143_v26  ;;  %v695_v40 = vadd.f32 %v2789_v51, %v582_v35  ;;  %v3168_v35 = vld [vmem:[#allocation2 + $0xb0] sm:$0xff] }
 0x120   : > { %v1709_v2 = vadd.f32 %v2911_v52, %v1670_v5  ;;  %v1266_v23 = vadd.f32 %v1234_v22, %v1165_v11  ;;  %v963_v36 = vadd.f32 %v931_v44, %v862_v24  ;;  %v3158_v18 = vpop.f32.mrf.mxu0  ;;  %v1539_v54 = vmul.f32 %v2842_v27, %v3048_v38 }
 0x121   : > { %v1570_v37 = vadd.f32 %v1538_v14, %v1469_v60  ;;  %3820 = vst [vmem:[#allocation16_spill] sm:$0xff] %v3158_v18  ;;  %v1640_v7 = vmul.f32 %v2889_v21, %v3145_v34  ;;  %v1235_v39 = vmul.f32 %v2833_v20, %v3024_v45  ;;  %v3166_v4 = vmax.f32 %v695_v40, 0.0 }
 0x122   : > { %v1741_v9 = vmax.f32 %v1709_v2, 0.0  ;;  %v1367_v5 = vadd.f32 %v1335_v29, %v1266_v23  ;;  %v1064_v1 = vadd.f32 %v1032_v59, %v963_v36  ;;  %v588_v14 = vpop.f32.mrf.mxu0  ;;  %v1336_v24 = vmul.f32 %v2852_v32, %v3110_v25  ;;  %v3178_v2 = vld [vmem:[#allocation2 + $0xb2] sm:$0xff] }
 0x123   : > { %v1671_v22 = vadd.f32 %v1639_v42, %v1570_v37  ;;  %v863_v11 = vmul.f32 %v2794_v53, %v3071_v62  ;;  %v932_v44 = vmul.f32 %v2802_v57, %v2998_v41  ;;  %799 = vst [vmem:[#allocation2 + $0xe1] sm:$0xff] %v3166_v4  ;;  %v696_v60 = vadd.f32 %v2789_v51, %v588_v14 }
 0x124   : > { %2343 = vmatprep.mubr.f32.mxu1 %v1741_v9  ;;  %v1470_v29 = vadd.f32 %v1438_v63, %v1367_v5  ;;  %v1166_v59 = vadd.f32 %v1134_v48, %v1064_v1  ;;  %v1033_v42 = vmul.f32 %v2809_v0, %v3082_v43  ;;  %v3183_v23 = vpop.f32.mrf.mxu0  ;;  %v1439_v62 = vmul.f32 %v2873_v58, %v3168_v35  ;;  %v3193_v9 = vld [vmem:[#allocation2 + $0xc0] sm:$0xff] }
 0x125   : > { %v1710_v40 = vadd.f32 %v2911_v52, %v1671_v22  ;;  %3821 = vst [vmem:[#allocation17_spill] sm:$0xff] %v3183_v23  ;;  %v964_v41 = vadd.f32 %v932_v44, %v863_v11  ;;  %v1135_v36 = vmul.f32 %v2826_v16, %v3135_v6  ;;  %v3189_v37 = vmax.f32 %v696_v60, 0.0 }
 0x126   : > { %v1571_v63 = vadd.f32 %v1539_v54, %v1470_v29  ;;  %v1267_v1 = vadd.f32 %v1235_v39, %v1166_v59  ;;  %v1540_v48 = vmul.f32 %v2842_v27, %v3073_v46  ;;  %v594_v5 = vpop.f32.mrf.mxu0  ;;  %v1641_v22 = vmul.f32 %v2889_v21, %v3178_v2 }
 0x127   : > { %v1742_v43 = vmax.f32 %v1710_v40, 0.0  ;;  %v1065_v14 = vadd.f32 %v1033_v42, %v964_v41  ;;  %v1236_v11 = vmul.f32 %v2833_v20, %v3048_v38  ;;  %800 = vst [vmem:[#allocation2 + $0xf1] sm:$0xff] %v3189_v37  ;;  %v697_v54 = vadd.f32 %v2789_v51, %v594_v5  ;;  %v3207_v42 = vld [vmem:[#allocation2 + $0xc2] sm:$0xff] }
 0x128   : > { %v1672_v44 = vadd.f32 %v1640_v7, %v1571_v63  ;;  %v1368_v39 = vadd.f32 %v1336_v24, %v1267_v1  ;;  %v1337_v60 = vmul.f32 %v2852_v32, %v3145_v34  ;;  %v3203_v29 = vpop.f32.mrf.mxu0  ;;  %v1440_v40 = vmul.f32 %v2873_v58, %v3193_v9 }
 0x129   : > { %2344 = vmatmul.mubr.f32.gmra.mxu1 %v1742_v43  ;;  %3822 = vst [vmem:[#allocation18_spill] sm:$0xff] %v3203_v29  ;;  %v1167_v59 = vadd.f32 %v1135_v36, %v1065_v14  ;;  %v864_v41 = vmul.f32 %v2794_v53, %v3102_v49  ;;  %v933_v7 = vmul.f32 %v2802_v57, %v3024_v45  ;;  %v3214_v63 = vmax.f32 %v697_v54, 0.0  ;;  %v3218_v36 = vpop.f32.mrf.mxu1 }
 0x12a   : > { %v1711_v24 = vadd.f32 %v2911_v52, %v1672_v44  ;;  %v1471_v1 = vadd.f32 %v1439_v62, %v1368_v39  ;;  %v1541_v43 = vmul.f32 %v2842_v27, %v3096_v31  ;;  %3823 = vst [vmem:[#allocation19_spill] sm:$0xff] %v3218_v36  ;;  %v600_v5 = vpop.f32.mrf.mxu0  ;;  %v1034_v23 = vmul.f32 %v2809_v0, %v3110_v25  ;;  %v3228_v39 = vld [vmem:[#allocation2 + $0xc8] sm:$0xff] }
 0x12b   : > { %v1268_v14 = vadd.f32 %v1236_v11, %v1167_v59  ;;  %v965_v29 = vadd.f32 %v933_v7, %v864_v41  ;;  %v1136_v49 = vmul.f32 %v2826_v16, %v3168_v35  ;;  %801 = vst [vmem:[#allocation2 + $0xf9] sm:$0xff] %v3214_v63  ;;  %v698_v62 = vadd.f32 %v2789_v51, %v600_v5  ;;  %v648_v5 = vpop.f32.mrf.mxu1 }
 0x12c   : > { %v1743_v45 = vmax.f32 %v1711_v24, 0.0  ;;  %v1572_v44 = vadd.f32 %v1540_v48, %v1471_v1  ;;  %v1642_v54 = vmul.f32 %v2889_v21, %v3207_v42  ;;  %v3230_v11 = vpop.f32.mrf.mxu0  ;;  %v1237_v25 = vmul.f32 %v2833_v20, %v3073_v46  ;;  %v3238_v24 = vld [vmem:[#allocation2 + $0xca] sm:$0xff] }
 0x12d   : > { %v1369_v36 = vadd.f32 %v1337_v60, %v1268_v14  ;;  %3824 = vst [vmem:[#allocation20_spill] sm:$0xff] %v3230_v11  ;;  %v1066_v59 = vadd.f32 %v1034_v23, %v965_v29  ;;  %v1338_v41 = vmul.f32 %v2852_v32, %v3178_v2  ;;  %v3236_v48 = vmax.f32 %v698_v62, 0.0 }
 0x12e   : > { %2346 = vmatprep.mubr.f32.mxu1 %v1743_v45  ;;  %v1673_v7 = vadd.f32 %v1641_v22, %v1572_v44  ;;  %v865_v1 = vmul.f32 %v2794_v53, %v3135_v6  ;;  %v934_v60 = vmul.f32 %v2802_v57, %v3048_v38  ;;  %v606_v29 = vpop.f32.mrf.mxu0  ;;  %v1441_v11 = vmul.f32 %v2873_v58, %v3228_v39 }
 0x12f   : > { %v1472_v23 = vadd.f32 %v1440_v40, %v1369_v36  ;;  %v1168_v14 = vadd.f32 %v1136_v49, %v1066_v59  ;;  %v1035_v22 = vmul.f32 %v2809_v0, %v3145_v34  ;;  %802 = vst [vmem:[#allocation2 + $0x109] sm:$0xff] %v3236_v48  ;;  %v699_v44 = vadd.f32 %v2789_v51, %v606_v29  ;;  %v3265_v29 = vpop.f32.mrf.mxu1 }
 0x130   : > { %v1712_v45 = vadd.f32 %v2911_v52, %v1673_v7  ;;  %v966_v6 = vadd.f32 %v934_v60, %v865_v1  ;;  %v1137_v38 = vmul.f32 %v2826_v16, %v3193_v9  ;;  %v1542_v36 = vmul.f32 %v2842_v27, %v3122_v33  ;;  %v3257_v59 = vpop.f32.mrf.mxu0  ;;  %v3263_v60 = vld [vmem:[#allocation2 + $0xd8] sm:$0xff]  ;;  %3826 = vst [vmem:[#allocation22_spill] sm:$0xff] %v3265_v29 }
 0x131   : > { %v1573_v62 = vadd.f32 %v1541_v43, %v1472_v23  ;;  %v1269_v40 = vadd.f32 %v1237_v25, %v1168_v14  ;;  %v1643_v49 = vmul.f32 %v2889_v21, %v3238_v24  ;;  %3825 = vst [vmem:[#allocation21_spill] sm:$0xff] %v3257_v59  ;;  %v3259_v7 = vmax.f32 %v699_v44, 0.0  ;;  %v3274_v44 = vld [vmem:[#allocation2 + $0xda] sm:$0xff] }
 0x132   : > { %v1744_v34 = vmax.f32 %v1712_v45, 0.0  ;;  %v1067_v18 = vadd.f32 %v1035_v22, %v966_v6  ;;  %v1238_v1 = vmul.f32 %v2833_v20, %v3096_v31  ;;  %v612_v23 = vpop.f32.mrf.mxu0  ;;  %v1339_v14 = vmul.f32 %v2852_v32, %v3207_v42 }
 0x133   : > { %v1674_v43 = vadd.f32 %v1642_v54, %v1573_v62  ;;  %v1370_v25 = vadd.f32 %v1338_v41, %v1269_v40  ;;  %803 = vst [vmem:[#allocation2 + $0x111] sm:$0xff] %v3259_v7  ;;  %v700_v22 = vadd.f32 %v2789_v51, %v612_v23  ;;  %v866_v6 = vmul.f32 %v2794_v53, %v3168_v35  ;;  %v654_v23 = vpop.f32.mrf.mxu1 }
 0x134   : > { %2347 = vmatmul.mubr.f32.gmra.mxu1 %v1744_v34  ;;  %v1169_v45 = vadd.f32 %v1137_v38, %v1067_v18  ;;  %v935_v54 = vmul.f32 %v2802_v57, %v3073_v46  ;;  %v1442_v13 = vmul.f32 %v2873_v58, %v3263_v60  ;;  %v3283_v40 = vpop.f32.mrf.mxu0  ;;  %v1036_v18 = vmul.f32 %v2809_v0, %v3178_v2 }
 0x135   : > { %v1713_v41 = vadd.f32 %v2911_v52, %v1674_v43  ;;  %v1473_v62 = vadd.f32 %v1441_v11, %v1370_v25  ;;  %3827 = vst [vmem:[#allocation23_spill] sm:$0xff] %v3283_v40  ;;  %v3288_v38 = vmax.f32 %v700_v22, 0.0  ;;  %v1138_v46 = vmul.f32 %v2826_v16, %v3228_v39 }
 0x136   : > { %v1270_v34 = vadd.f32 %v1238_v1, %v1169_v45  ;;  %v967_v35 = vadd.f32 %v935_v54, %v866_v6  ;;  %v1543_v25 = vmul.f32 %v2842_v27, %v3143_v26  ;;  %v1644_v29 = vmul.f32 %v2889_v21, %v3274_v44  ;;  %v618_v40 = vpop.f32.mrf.mxu0  ;;  %v3300_v6 = vld [vmem:[#allocation2 + $0xe0] sm:$0xff] }
 0x137   : > { %v1745_v43 = vmax.f32 %v1713_v41, 0.0  ;;  %v1574_v11 = vadd.f32 %v1542_v36, %v1473_v62  ;;  %804 = vst [vmem:[#allocation2 + $0x121] sm:$0xff] %v3288_v38  ;;  %v701_v22 = vadd.f32 %v2789_v51, %v618_v40  ;;  %v1239_v45 = vmul.f32 %v2833_v20, %v3122_v33 }
 0x138   : > { %v1371_v2 = vadd.f32 %v1339_v14, %v1270_v34  ;;  %v1068_v1 = vadd.f32 %v1036_v18, %v967_v35  ;;  %v1340_v54 = vmul.f32 %v2852_v32, %v3238_v24  ;;  %v706_v41 = vadd.f32 %v2789_v51, %v648_v5  ;;  %v3309_v18 = vld [vmem:[#allocation2 + $0xe2] sm:$0xff]  ;;  %v3313_v35 = vpop.f32.mrf.mxu1 }
 0x139   : > { %2349 = vmatprep.mubr.f32.mxu1 %v1745_v43  ;;  %v1675_v36 = vadd.f32 %v1643_v49, %v1574_v11  ;;  %v867_v62 = vmul.f32 %v2794_v53, %v3193_v9  ;;  %v3307_v14 = vmax.f32 %v701_v22, 0.0  ;;  %v936_v34 = vmul.f32 %v2802_v57, %v3096_v31  ;;  %v3330_v22 = vld [vmem:[#allocation2 + $0xf0] sm:$0xff] }
 0x13a   : > { %v1474_v59 = vadd.f32 %v1442_v13, %v1371_v2  ;;  %v1170_v40 = vadd.f32 %v1138_v46, %v1068_v1  ;;  %v1443_v43 = vmul.f32 %v2873_v58, %v3300_v6  ;;  %v3318_v51 = vmax.f32 %v706_v41, 0.0  ;;  %v2422_v41 = vld [vmem:[%s3802_s2] ss:$0 sm:$0xff] }
 0x13b   : > { %v1714_v49 = vadd.f32 %v2911_v52, %v1675_v36  ;;  %v1037_v53 = vmul.f32 %v2809_v0, %v3207_v42  ;;  %805 = vst [vmem:[#allocation2 + $0x129] sm:$0xff] %v3307_v14  ;;  %v968_v13 = vadd.f32 %v936_v34, %v867_v62  ;;  %v1139_v31 = vmul.f32 %v2826_v16, %v3263_v60 }
 0x13c   : > { %v1575_v9 = vadd.f32 %v1543_v25, %v1474_v59  ;;  %v1271_v5 = vadd.f32 %v1239_v45, %v1170_v40  ;;  %v1544_v11 = vmul.f32 %v2842_v27, %v3166_v4  ;;  %v1645_v2 = vmul.f32 %v2889_v21, %v3309_v18  ;;  %810 = vst [vmem:[#allocation2 + $0x169] sm:$0xff] %v3318_v51  ;;  %v660_v45 = vpop.f32.mrf.mxu1 }
 0x13d   : > { %v1746_v46 = vmax.f32 %v1714_v49, 0.0  ;;  %v3334_v0 = vmul.f32 %v2802_v57, %v2828_v17  ;;  %v1069_v25 = vadd.f32 %v1037_v53, %v968_v13  ;;  %v1240_v1 = vmul.f32 %v2833_v20, %v3143_v26  ;;  %v3346_v57 = vld [vmem:[%s3803_s3] ss:$0 sm:$0xff]  ;;  %v3360_v53 = vld [vmem:[#allocation2 + $0xf2] sm:$0xff] }
 0x13e   : > { %v1676_v42 = vadd.f32 %v1644_v29, %v1575_v9  ;;  %v1372_v59 = vadd.f32 %v1340_v54, %v1271_v5  ;;  %v1341_v36 = vmul.f32 %v2852_v32, %v3274_v44  ;;  %v707_v62 = vadd.f32 %v2422_v41, %v654_v23  ;;  %v3353_v29 = vld [vmem:[%s3803_s3 + $0x1] ss:$0 sm:$0xff]  ;;  %v3367_v5 = vld [vmem:[%s3803_s3 + $0x2] ss:$0 sm:$0xff] }
 0x13f   : > { %2350 = vmatmul.mubr.f32.gmra.mxu1 %v1746_v46  ;;  %v868_v17 = vmul.f32 %v3346_v57, %v3228_v39  ;;  %v937_v54 = vmul.f32 %v3353_v29, %v3122_v33  ;;  %v1171_v23 = vadd.f32 %v1139_v31, %v1069_v25  ;;  %v1444_v49 = vmul.f32 %v2873_v58, %v3330_v22 }
 0x140   : > { %v1715_v40 = vadd.f32 %v2911_v52, %v1676_v42  ;;  %v1475_v34 = vadd.f32 %v1443_v43, %v1372_v59  ;;  %v3362_v9 = vmax.f32 %v707_v62, 0.0  ;;  %v1038_v33 = vmul.f32 %v3367_v5, %v3238_v24  ;;  %v3375_v59 = vpop.f32.mrf.mxu1 }
 0x141   : > { %v969_v39 = vadd.f32 %v937_v54, %v868_v17  ;;  %v1140_v43 = vmul.f32 %v2826_v16, %v3300_v6  ;;  %v1272_v46 = vadd.f32 %v1240_v1, %v1171_v23  ;;  %v1545_v42 = vmul.f32 %v2842_v27, %v3189_v37  ;;  %v3384_v1 = vld [vmem:[#allocation2 + $0xfa] sm:$0xff] }
 0x142   : > { %v1747_v13 = vmax.f32 %v1715_v40, 0.0  ;;  %v1576_v31 = vadd.f32 %v1544_v11, %v1475_v34  ;;  %v1646_v25 = vmul.f32 %v2889_v21, %v3360_v53  ;;  %811 = vst [vmem:[#allocation2 + $0x171] sm:$0xff] %v3362_v9  ;;  %v1241_v24 = vmul.f32 %v2833_v20, %v3166_v4  ;;  %v3382_v11 = vld [vmem:[#allocation2 + $0xf8] sm:$0xff] }
 0x143   : > { %v1070_v62 = vadd.f32 %v1038_v33, %v969_v39  ;;  %v708_v17 = vadd.f32 %v2422_v41, %v660_v45  ;;  %v1373_v54 = vadd.f32 %v1341_v36, %v1272_v46  ;;  %v869_v27 = vmul.f32 %v3346_v57, %v3263_v60  ;;  %v3400_v60 = vld [vmem:[%s3803_s3 + $0x4] ss:$0 sm:$0xff]  ;;  %v666_v33 = vpop.f32.mrf.mxu1 }
 0x144   : > { %2352 = vmatprep.mubr.f32.mxu1 %v1747_v13  ;;  %v1677_v16 = vadd.f32 %v1645_v2, %v1576_v31  ;;  %v938_v40 = vmul.f32 %v3353_v29, %v3143_v26  ;;  %v1342_v23 = vmul.f32 %v2852_v32, %v3309_v18  ;;  %v1039_v20 = vmul.f32 %v3367_v5, %v3274_v44  ;;  %v3409_v44 = vld [vmem:[%s3803_s3 + $0x9] ss:$0 sm:$0xff] }
 0x145   : > { %v1172_v34 = vadd.f32 %v1140_v43, %v1070_v62  ;;  %v3392_v39 = vmax.f32 %v708_v17, 0.0  ;;  %v1476_v45 = vadd.f32 %v1444_v49, %v1373_v54  ;;  %v1141_v26 = vmul.f32 %v3400_v60, %v3330_v22  ;;  %v3423_v54 = vld [vmem:[#allocation2 + $0x108] sm:$0xff] }
 0x146   : > { %v1716_v2 = vadd.f32 %v2911_v52, %v1677_v16  ;;  %v970_v36 = vadd.f32 %v938_v40, %v869_v27  ;;  %v1445_v32 = vmul.f32 %v2873_v58, %v3382_v11  ;;  %v1546_v49 = vmul.f32 %v3409_v44, %v3214_v63 }
 0x147   : > { %v1273_v43 = vadd.f32 %v1241_v24, %v1172_v34  ;;  %v1647_v13 = vmul.f32 %v2889_v21, %v3384_v1  ;;  %812 = vst [vmem:[#allocation2 + $0x181] sm:$0xff] %v3392_v39  ;;  %v1577_v46 = vadd.f32 %v1545_v42, %v1476_v45  ;;  %v3419_v24 = vld [vmem:[%s3803_s3 + $0x5] ss:$0 sm:$0xff]  ;;  %v709_v27 = vadd.f32 %v2422_v41, %v666_v33  ;;  %v3436_v45 = vld [vmem:[#allocation2 + $0x10a] sm:$0xff] }
 0x148   : > { %v1748_v31 = vmax.f32 %v1716_v2, 0.0  ;;  %v1071_v62 = vadd.f32 %v1039_v20, %v970_v36  ;;  %v1242_v17 = vmul.f32 %v3419_v24, %v3189_v37  ;;  %v870_v40 = vmul.f32 %v3346_v57, %v3300_v6  ;;  %v3432_v2 = vld [vmem:[%s3803_s3 + $0x6] ss:$0 sm:$0xff] }
 0x149   : > { %v1374_v16 = vadd.f32 %v1342_v23, %v1273_v43  ;;  %v939_v34 = vmul.f32 %v3353_v29, %v3166_v4  ;;  %v1678_v42 = vadd.f32 %v1646_v25, %v1577_v46  ;;  %v1343_v23 = vmul.f32 %v3432_v2, %v3360_v53 }
 0x14a   : > { %2353 = vmatmul.mubr.f32.gmra.mxu1 %v1748_v31  ;;  %v1173_v20 = vadd.f32 %v1141_v26, %v1071_v62  ;;  %v1040_v41 = vmul.f32 %v3367_v5, %v3309_v18  ;;  %v3440_v36 = vmax.f32 %v709_v27, 0.0  ;;  %v1142_v25 = vmul.f32 %v3400_v60, %v3382_v11 }
 0x14b   : > { %v1477_v6 = vadd.f32 %v1445_v32, %v1374_v16  ;;  %v971_v4 = vadd.f32 %v939_v34, %v870_v40  ;;  %v1717_v26 = vadd.f32 %v2911_v52, %v1678_v42  ;;  %v1446_v43 = vmul.f32 %v2873_v58, %v3423_v54  ;;  %v3454_v16 = vld [vmem:[#allocation2 + $0x110] sm:$0xff] }
 0x14c   : > { %v1274_v33 = vadd.f32 %v1242_v17, %v1173_v20  ;;  %v1547_v31 = vmul.f32 %v3409_v44, %v3236_v48  ;;  %v1648_v18 = vmul.f32 %v2889_v21, %v3436_v45  ;;  %813 = vst [vmem:[#allocation2 + $0x189] sm:$0xff] %v3440_v36  ;;  %v1243_v62 = vmul.f32 %v3419_v24, %v3214_v63  ;;  %v3456_v40 = vld [vmem:[#allocation2 + $0x112] sm:$0xff] }
 0x14d   : > { %v1578_v46 = vadd.f32 %v1546_v49, %v1477_v6  ;;  %v1072_v32 = vadd.f32 %v1040_v41, %v971_v4  ;;  %v1749_v27 = vmax.f32 %v1717_v26, 0.0  ;;  %v871_v58 = vmul.f32 %v3346_v57, %v3330_v22 }
 0x14e   : > { %v1375_v17 = vadd.f32 %v1343_v23, %v1274_v33  ;;  %v940_v49 = vmul.f32 %v3353_v29, %v3189_v37  ;;  %v1344_v42 = vmul.f32 %v3432_v2, %v3384_v1  ;;  %v1041_v20 = vmul.f32 %v3367_v5, %v3360_v53  ;;  %v3469_v23 = vld [vmem:[%s3803_s3 + $0x8] ss:$0 sm:$0xff]  ;;  %v3485_v33 = vld [vmem:[#allocation2 + $0x120] sm:$0xff] }
 0x14f   : > { %v1679_v34 = vadd.f32 %v1647_v13, %v1578_v46  ;;  %v1174_v21 = vadd.f32 %v1142_v25, %v1072_v32  ;;  %2355 = vmatprep.mubr.f32.mxu1 %v1749_v27  ;;  %v1447_v22 = vmul.f32 %v3469_v23, %v3454_v16  ;;  %v1143_v37 = vmul.f32 %v3400_v60, %v3423_v54  ;;  %v3481_v25 = vld [vmem:[%s3803_s3 + $0xa] ss:$0 sm:$0xff] }
 0x150   : > { %v1478_v41 = vadd.f32 %v1446_v43, %v1375_v17  ;;  %v972_v6 = vadd.f32 %v940_v49, %v871_v58  ;;  %v1548_v53 = vmul.f32 %v3409_v44, %v3259_v7  ;;  %v1649_v26 = vmul.f32 %v3481_v25, %v3456_v40  ;;  %v3493_v58 = vld [vmem:[#allocation2 + $0x122] sm:$0xff] }
 0x151   : > { %v1718_v13 = vadd.f32 %v2911_v52, %v1679_v34  ;;  %v1275_v4 = vadd.f32 %v1243_v62, %v1174_v21  ;;  %v1244_v32 = vmul.f32 %v3419_v24, %v3236_v48  ;;  %v872_v52 = vmul.f32 %v3346_v57, %v3382_v11 }
 0x152   : > { %v1579_v43 = vadd.f32 %v1547_v31, %v1478_v41  ;;  %v1073_v46 = vadd.f32 %v1041_v20, %v972_v6  ;;  %v1345_v17 = vmul.f32 %v3432_v2, %v3436_v45  ;;  %v941_v49 = vmul.f32 %v3353_v29, %v3214_v63  ;;  %v3508_v63 = vld [vmem:[%s3804_s4] ss:$0 sm:$0xff] }
 0x153   : > { %v1750_v62 = vmax.f32 %v1718_v13, 0.0  ;;  %v1376_v27 = vadd.f32 %v1344_v42, %v1275_v4  ;;  %v1448_v31 = vmul.f32 %v3469_v23, %v3485_v33  ;;  %v1549_v20 = vmul.f32 %v3409_v44, %v3288_v38 }
 0x154   : > { %v1680_v34 = vadd.f32 %v1648_v18, %v1579_v43  ;;  %v1175_v21 = vadd.f32 %v1143_v37, %v1073_v46  ;;  %v973_v41 = vadd.f32 %v941_v49, %v872_v52  ;;  %v1042_v42 = vmul.f32 %v3367_v5, %v3384_v1  ;;  %v3515_v1 = vld [vmem:[#allocation2 + $0x128] sm:$0xff] }
 0x155   : > { %2356 = vmatmul.mubr.f32.gmra.mxu1 %v1750_v62  ;;  %v1479_v11 = vadd.f32 %v1447_v22, %v1376_v27  ;;  %v1144_v6 = vmul.f32 %v3400_v60, %v3454_v16  ;;  %v1650_v13 = vmul.f32 %v3481_v25, %v3493_v58  ;;  %v1245_v22 = vmul.f32 %v3419_v24, %v3259_v7  ;;  %v3517_v46 = vld [vmem:[#allocation2 + $0x12a] sm:$0xff] }
 0x156   : > { %v1719_v18 = vadd.f32 %v3508_v63, %v1680_v34  ;;  %v1276_v37 = vadd.f32 %v1244_v32, %v1175_v21  ;;  %v1074_v43 = vadd.f32 %v1042_v42, %v973_v41  ;;  %v873_v52 = vmul.f32 %v3346_v57, %v3423_v54 }
 0x157   : > { %v1580_v4 = vadd.f32 %v1548_v53, %v1479_v11  ;;  %v942_v62 = vmul.f32 %v3353_v29, %v3236_v48  ;;  %v1346_v49 = vmul.f32 %v3432_v2, %v3456_v40  ;;  %v1043_v34 = vmul.f32 %v3367_v5, %v3436_v45 }
 0x158   : > { %v1751_v27 = vmax.f32 %v1719_v18, 0.0  ;;  %v1377_v32 = vadd.f32 %v1345_v17, %v1276_v37  ;;  %v1176_v21 = vadd.f32 %v1144_v6, %v1074_v43  ;;  %v1145_v41 = vmul.f32 %v3400_v60, %v3485_v33  ;;  %v3542_v43 = vld [vmem:[#allocation2 + $0x138] sm:$0xff] }
 0x159   : > { %v1681_v53 = vadd.f32 %v1649_v26, %v1580_v4  ;;  %v974_v11 = vadd.f32 %v942_v62, %v873_v52  ;;  %v1449_v54 = vmul.f32 %v3469_v23, %v3515_v1  ;;  %v1550_v48 = vmul.f32 %v3409_v44, %v3307_v14 }
 0x15a   : > { %2358 = vmatprep.mubr.f32.mxu1 %v1751_v27  ;;  %v1480_v42 = vadd.f32 %v1448_v31, %v1377_v32  ;;  %v1651_v17 = vmul.f32 %v3481_v25, %v3517_v46  ;;  %v1277_v45 = vadd.f32 %v1245_v22, %v1176_v21  ;;  %v874_v6 = vmul.f32 %v3346_v57, %v3454_v16  ;;  %v1615_v16 = vld [vmem:[#allocation2 + $0x13a] sm:$0xff] }
 0x15b   : > { %v1720_v18 = vadd.f32 %v3508_v63, %v1681_v53  ;;  %v1075_v26 = vadd.f32 %v1043_v34, %v974_v11  ;;  %v1246_v31 = vmul.f32 %v3419_v24, %v3288_v38  ;;  %v1347_v4 = vmul.f32 %v3432_v2, %v3493_v58 }
 0x15c   : > { %v1581_v37 = vadd.f32 %v1549_v20, %v1480_v42  ;;  %v943_v52 = vmul.f32 %v3353_v29, %v3259_v7  ;;  %v1378_v27 = vadd.f32 %v1346_v49, %v1277_v45  ;;  %v1450_v22 = vmul.f32 %v3469_v23, %v3542_v43 }
 0x15d   : > { %v1752_v62 = vmax.f32 %v1720_v18, 0.0  ;;  %v1177_v32 = vadd.f32 %v1145_v41, %v1075_v26  ;;  %v1044_v53 = vmul.f32 %v3367_v5, %v3456_v40  ;;  %v1146_v21 = vmul.f32 %v3400_v60, %v3515_v1 }
 0x15e   : > { %v1682_v34 = vadd.f32 %v1650_v13, %v1581_v37  ;;  %v975_v20 = vadd.f32 %v943_v52, %v874_v6  ;;  %v1481_v11 = vadd.f32 %v1449_v54, %v1378_v27  ;;  %v1652_v7 = vmul.f32 %v3481_v25, %v1615_v16  ;;  %v1413_v52 = vld [vmem:[#allocation2 + $0x140] sm:$0xff] }
 0x15f   : > { %2359 = vmatmul.mubr.f32.gmra.mxu1 %v1752_v62  ;;  %v1278_v42 = vadd.f32 %v1246_v31, %v1177_v32  ;;  %v1247_v49 = vmul.f32 %v3419_v24, %v3307_v14  ;;  %v875_v13 = vmul.f32 %v3346_v57, %v3485_v33  ;;  %v944_v40 = vmul.f32 %v3353_v29, %v3288_v38  ;;  %v2433_v38 = vld [vmem:[#allocation2 + $0x141] sm:$0xff] }
 0x160   : > { %v1721_v41 = vadd.f32 %v3508_v63, %v1682_v34  ;;  %v1076_v18 = vadd.f32 %v1044_v53, %v975_v20  ;;  %v1582_v45 = vadd.f32 %v1550_v48, %v1481_v11  ;;  %v1348_v54 = vmul.f32 %v3432_v2, %v3517_v46 }
 0x161   : > { %v1379_v26 = vadd.f32 %v1347_v4, %v1278_v42  ;;  %v1045_v6 = vmul.f32 %v3367_v5, %v3493_v58  ;;  %v976_v62 = vadd.f32 %v944_v40, %v875_v13  ;;  %v1147_v27 = vmul.f32 %v3400_v60, %v3542_v43  ;;  %v1616_v4 = vld [vmem:[#allocation2 + $0x142] sm:$0xff] }
 0x162   : > { %v1753_v37 = vmax.f32 %v1721_v41, 0.0  ;;  %v1178_v31 = vadd.f32 %v1146_v21, %v1076_v18  ;;  %v1683_v32 = vadd.f32 %v1651_v17, %v1582_v45  ;;  %v1451_v34 = vmul.f32 %v3469_v23, %v1413_v52 }
 0x163   : > { %v1482_v33 = vadd.f32 %v1450_v22, %v1379_v26  ;;  %v1552_v48 = vmul.f32 %v2433_v38, %v3409_v44  ;;  %v1653_v53 = vmul.f32 %v3481_v25, %v1616_v4  ;;  %v1077_v58 = vadd.f32 %v1045_v6, %v976_v62  ;;  %v3574_v22 = vld [vmem:[#allocation2 + $0x150] sm:$0xff] }
 0x164   : > { %2361 = vmatprep.mubr.f32.mxu1 %v1753_v37  ;;  %v1279_v20 = vadd.f32 %v1247_v49, %v1178_v31  ;;  %v876_v21 = vmul.f32 %v3346_v57, %v3515_v1  ;;  %v1722_v11 = vadd.f32 %v3508_v63, %v1683_v32  ;;  %v1349_v17 = vmul.f32 %v3432_v2, %v1615_v16  ;;  %v3582_v26 = vld [vmem:[#allocation2 + $0x152] sm:$0xff] }
 0x165   : > { %v1583_v42 = vadd.f32 %v2863_v47, %v1482_v33  ;;  %v945_v41 = vmul.f32 %v3353_v29, %v3307_v14  ;;  %v1179_v13 = vadd.f32 %v1147_v27, %v1077_v58  ;;  %v1452_v49 = vmul.f32 %v3469_v23, %v3574_v22  ;;  %v2434_v62 = vld [vmem:[#allocation2 + $0x151] sm:$0xff] }
 0x166   : > { %v1380_v18 = vadd.f32 %v1348_v54, %v1279_v20  ;;  %v1046_v40 = vmul.f32 %v3367_v5, %v3517_v46  ;;  %v1754_v1 = vmax.f32 %v1722_v11, 0.0  ;;  %v1148_v6 = vmul.f32 %v3400_v60, %v1413_v52  ;;  %v1415_v11 = vld [vmem:[#allocation2 + $0x158] sm:$0xff] }
 0x167   : > { %v1684_v45 = vadd.f32 %v1652_v7, %v1583_v42  ;;  %v977_v47 = vadd.f32 %v945_v41, %v876_v21  ;;  %v1280_v31 = vadd.f32 %v2996_v10, %v1179_v13  ;;  %v1553_v14 = vmul.f32 %v2434_v62, %v3409_v44 }
 0x168   : > { %v1483_v37 = vadd.f32 %v1451_v34, %v1380_v18  ;;  %v1654_v54 = vmul.f32 %v3481_v25, %v3582_v26  ;;  %2362 = vmatmul.mubr.f32.gmra.mxu1 %v1754_v1  ;;  %v1249_v7 = vmul.f32 %v2433_v38, %v3419_v24  ;;  %v877_v32 = vmul.f32 %v3346_v57, %v3542_v43 }
 0x169   : > { %v1723_v27 = vadd.f32 %v3508_v63, %v1684_v45  ;;  %v1078_v46 = vadd.f32 %v1046_v40, %v977_v47  ;;  %v1381_v20 = vadd.f32 %v1349_v17, %v1280_v31  ;;  %v1350_v34 = vmul.f32 %v3432_v2, %v1616_v4 }
 0x16a   : > { %v1584_v33 = vadd.f32 %v1552_v48, %v1483_v37  ;;  %v1047_v10 = vmul.f32 %v3367_v5, %v1615_v16  ;;  %v978_v42 = vadd.f32 %v3334_v0, %v877_v32  ;;  %v1149_v41 = vmul.f32 %v3400_v60, %v3574_v22  ;;  %v1618_v48 = vld [vmem:[#allocation2 + $0x15a] sm:$0xff] }
 0x16b   : > { %v1755_v58 = vmax.f32 %v1723_v27, 0.0  ;;  %v1180_v21 = vadd.f32 %v1148_v6, %v1078_v46  ;;  %v1484_v13 = vadd.f32 %v1452_v49, %v1381_v20  ;;  %v1453_v40 = vmul.f32 %v3469_v23, %v1415_v11  ;;  %v3604_v6 = vld [vmem:[#allocation2 + $0x168] sm:$0xff] }
 0x16c   : > { %v1685_v18 = vadd.f32 %v1653_v53, %v1584_v33  ;;  %v1554_v43 = vmul.f32 %v3409_v44, %v3270_v8  ;;  %v1655_v16 = vmul.f32 %v3481_v25, %v1618_v48  ;;  %v1079_v1 = vadd.f32 %v1047_v10, %v978_v42  ;;  %v3610_v46 = vld [vmem:[#allocation2 + $0x16a] sm:$0xff] }
 0x16d   : > { %2364 = vmatprep.mubr.f32.mxu1 %v1755_v58  ;;  %v1281_v17 = vadd.f32 %v1249_v7, %v1180_v21  ;;  %v1250_v45 = vmul.f32 %v2434_v62, %v3419_v24  ;;  %v1585_v47 = vadd.f32 %v1553_v14, %v1484_v13  ;;  %v878_v53 = vmul.f32 %v3346_v57, %v1413_v52 }
 0x16e   : > { %v1724_v0 = vadd.f32 %v3508_v63, %v1685_v18  ;;  %v947_v49 = vmul.f32 %v2433_v38, %v3353_v29  ;;  %v1181_v31 = vadd.f32 %v1149_v41, %v1079_v1  ;;  %v1351_v27 = vmul.f32 %v3432_v2, %v3582_v26  ;;  %v3623_v18 = vld [vmem:[#allocation2 + $0x170] sm:$0xff] }
 0x16f   : > { %v1382_v37 = vadd.f32 %v1350_v34, %v1281_v17  ;;  %v1048_v7 = vmul.f32 %v3367_v5, %v1616_v4  ;;  %v1686_v33 = vadd.f32 %v1654_v54, %v1585_v47  ;;  %v1150_v14 = vmul.f32 %v3400_v60, %v1415_v11 }
 0x170   : > { %v1756_v32 = vmax.f32 %v1724_v0, 0.0  ;;  %v979_v20 = vadd.f32 %v947_v49, %v878_v53  ;;  %v1282_v58 = vadd.f32 %v1250_v45, %v1181_v31  ;;  %v1454_v52 = vmul.f32 %v3469_v23, %v3604_v6 }
 0x171   : > { %v1485_v10 = vadd.f32 %v1453_v40, %v1382_v37  ;;  %v1555_v38 = vmul.f32 %v3409_v44, %v3318_v51  ;;  %v1725_v34 = vadd.f32 %v3508_v63, %v1686_v33  ;;  %v1656_v21 = vmul.f32 %v3481_v25, %v3610_v46  ;;  %v1418_v33 = vld [vmem:[#allocation2 + $0x180] sm:$0xff] }
 0x172   : > { %2365 = vmatmul.mubr.f32.gmra.mxu1 %v1756_v32  ;;  %v1080_v4 = vadd.f32 %v1048_v7, %v979_v20  ;;  %v1251_v54 = vmul.f32 %v3419_v24, %v3270_v8  ;;  %v1383_v41 = vadd.f32 %v1351_v27, %v1282_v58  ;;  %v879_v13 = vmul.f32 %v3346_v57, %v3574_v22  ;;  %v1620_v7 = vld [vmem:[#allocation2 + $0x172] sm:$0xff] }
 0x173   : > { %v1586_v42 = vadd.f32 %v1554_v43, %v1485_v10  ;;  %v948_v40 = vmul.f32 %v2434_v62, %v3353_v29  ;;  %v1757_v17 = vmax.f32 %v1725_v34, 0.0  ;;  %v1352_v45 = vmul.f32 %v3432_v2, %v1618_v48 }
 0x174   : > { %v1182_v1 = vadd.f32 %v1150_v14, %v1080_v4  ;;  %v1049_v0 = vmul.f32 %v3367_v5, %v3582_v26  ;;  %v1486_v53 = vadd.f32 %v1454_v52, %v1383_v41  ;;  %v1151_v43 = vmul.f32 %v3400_v60, %v3604_v6 }
 0x175   : > { %v1687_v47 = vadd.f32 %v1655_v16, %v1586_v42  ;;  %v980_v49 = vadd.f32 %v948_v40, %v879_v13  ;;  %2367 = vmatprep.mubr.f32.mxu1 %v1757_v17  ;;  %v1455_v22 = vmul.f32 %v3469_v23, %v3623_v18  ;;  %v1556_v62 = vmul.f32 %v3409_v44, %v3362_v9 }
 0x176   : > { %v1283_v37 = vadd.f32 %v1251_v54, %v1182_v1  ;;  %v1587_v27 = vadd.f32 %v1555_v38, %v1486_v53  ;;  %v1252_v26 = vmul.f32 %v3419_v24, %v3318_v51  ;;  %v880_v20 = vmul.f32 %v3346_v57, %v1415_v11 }
 0x177   : > { %v1726_v31 = vadd.f32 %v3508_v63, %v1687_v47  ;;  %v1081_v32 = vadd.f32 %v1049_v0, %v980_v49  ;;  %v949_v14 = vmul.f32 %v3353_v29, %v3270_v8  ;;  %v1050_v10 = vmul.f32 %v3367_v5, %v1618_v48 }
 0x178   : > { %v1384_v16 = vadd.f32 %v1352_v45, %v1283_v37  ;;  %v1688_v52 = vadd.f32 %v1656_v21, %v1587_v27  ;;  %v1353_v38 = vmul.f32 %v3432_v2, %v3610_v46  ;;  %v1657_v54 = vmul.f32 %v3481_v25, %v1620_v7  ;;  %v1621_v21 = vld [vmem:[#allocation2 + $0x182] sm:$0xff] }
 0x179   : > { %v1758_v58 = vmax.f32 %v1726_v31, 0.0  ;;  %v1183_v34 = vadd.f32 %v1151_v43, %v1081_v32  ;;  %v981_v42 = vadd.f32 %v949_v14, %v880_v20  ;;  %v1152_v41 = vmul.f32 %v3400_v60, %v3623_v18  ;;  %v1419_v31 = vld [vmem:[#allocation2 + $0x188] sm:$0xff] }
 0x17a   : > { %v1487_v4 = vadd.f32 %v1455_v22, %v1384_v16  ;;  %v1727_v11 = vadd.f32 %v3508_v63, %v1688_v52  ;;  %v1456_v8 = vmul.f32 %v3469_v23, %v1418_v33  ;;  %v1557_v48 = vmul.f32 %v3409_v44, %v3392_v39 }
 0x17b   : > { %2368 = vmatmul.mubr.f32.gmra.mxu1 %v1758_v58  ;;  %v1284_v13 = vadd.f32 %v1252_v26, %v1183_v34  ;;  %v1082_v17 = vadd.f32 %v1050_v10, %v981_v42  ;;  %v1253_v1 = vmul.f32 %v3419_v24, %v3362_v9  ;;  %v881_v45 = vmul.f32 %v3346_v57, %v3604_v6  ;;  %v1622_v42 = vld [vmem:[#allocation2 + $0x18a] sm:$0xff] }
 0x17c   : > { %v1588_v40 = vadd.f32 %v1556_v62, %v1487_v4  ;;  %v1759_v0 = vmax.f32 %v1727_v11, 0.0  ;;  %v950_v53 = vmul.f32 %v3353_v29, %v3318_v51  ;;  %v1051_v49 = vmul.f32 %v3367_v5, %v3610_v46  ;;  %v1522_v11 = vld [vmem:[#allocation2 + $0x199] sm:$0xff] }
 0x17d   : > { %v1385_v47 = vadd.f32 %v1353_v38, %v1284_v13  ;;  %v1658_v37 = vmul.f32 %v3481_v25, %v1621_v21  ;;  %v1184_v22 = vadd.f32 %v1152_v41, %v1082_v17  ;;  %v1354_v62 = vmul.f32 %v3432_v2, %v1620_v7  ;;  %v1623_v17 = vld [vmem:[#allocation2 + $0x19a] sm:$0xff] }
 0x17e   : > { %v1689_v43 = vadd.f32 %v1657_v54, %v1588_v40  ;;  %2370 = vmatprep.mubr.f32.mxu1 %v1759_v0  ;;  %v1457_v32 = vmul.f32 %v3469_v23, %v1419_v31  ;;  %v982_v6 = vadd.f32 %v950_v53, %v881_v45  ;;  %v1153_v26 = vmul.f32 %v3400_v60, %v1418_v33  ;;  %v1523_v53 = vld [vmem:[#allocation2 + $0x1a1] sm:$0xff] }
 0x17f   : > { %v1488_v27 = vadd.f32 %v1456_v8, %v1385_v47  ;;  %v1285_v51 = vadd.f32 %v1253_v1, %v1184_v22  ;;  %v1558_v46 = vmul.f32 %v3409_v44, %v3440_v36  ;;  %v1254_v20 = vmul.f32 %v3419_v24, %v3392_v39  ;;  %v1624_v22 = vld [vmem:[#allocation2 + $0x1a2] sm:$0xff] }
 0x180   : > { %v1728_v16 = vadd.f32 %v3508_v63, %v1689_v43  ;;  %v1083_v10 = vadd.f32 %v1051_v49, %v982_v6  ;;  %v882_v58 = vmul.f32 %v3346_v57, %v3623_v18  ;;  %v951_v52 = vmul.f32 %v3353_v29, %v3362_v9  ;;  %v2435_v18 = vld [vmem:[#allocation2] sm:$0xff] }
 0x181   : > { %v1589_v14 = vadd.f32 %v1557_v48, %v1488_v27  ;;  %v1386_v38 = vadd.f32 %v1354_v62, %v1285_v51  ;;  %v1355_v33 = vmul.f32 %v3432_v2, %v1621_v21  ;;  %v1052_v4 = vmul.f32 %v3367_v5, %v1620_v7 }
 0x182   : > { %v1760_v34 = vmax.f32 %v1728_v16, 0.0  ;;  %v1185_v41 = vadd.f32 %v1153_v26, %v1083_v10  ;;  %v983_v13 = vadd.f32 %v951_v52, %v882_v58  ;;  %v1154_v39 = vmul.f32 %v3400_v60, %v1419_v31 }
 0x183   : > { %v1690_v54 = vadd.f32 %v1658_v37, %v1589_v14  ;;  %v1489_v8 = vadd.f32 %v1457_v32, %v1386_v38  ;;  %v1659_v57 = vmul.f32 %v3481_v25, %v1622_v42  ;;  %v1458_v29 = vmul.f32 %v2435_v18, %v3469_v23  ;;  %v3690_v14 = vpop.f32.mrf.mxu1 }
 0x184   : > { %2371 = vmatmul.mubr.f32.gmra.mxu1 %v1760_v34  ;;  %v1286_v48 = vadd.f32 %v1254_v20, %v1185_v41  ;;  %v1084_v21 = vadd.f32 %v1052_v4, %v983_v13  ;;  %v1255_v5 = vmul.f32 %v3419_v24, %v3440_v36  ;;  %v1559_v40 = vmul.f32 %v3409_v44, %v1522_v11 }
 0x185   : > { %v1729_v9 = vadd.f32 %v3508_v63, %v1690_v54  ;;  %v1590_v7 = vadd.f32 %v1558_v46, %v1489_v8  ;;  %v1356_v0 = vmul.f32 %v3432_v2, %v1622_v42  ;;  %v1660_v49 = vmul.f32 %v3481_v25, %v1623_v17 }
 0x186   : > { %v1387_v60 = vadd.f32 %v1355_v33, %v1286_v48  ;;  %v1186_v45 = vadd.f32 %v1154_v39, %v1084_v21  ;;  %v1560_v62 = vmul.f32 %v3409_v44, %v1523_v53  ;;  %v1661_v6 = vmul.f32 %v3481_v25, %v1624_v22  ;;  %v3695_v44 = vld [vmem:[%s3806_s6] ss:$0 sm:$0xff] }
 0x187   : > { %v1761_v1 = vmax.f32 %v1729_v9, 0.0  ;;  %v1691_v47 = vadd.f32 %v1659_v57, %v1590_v7 }
 0x188   : > { %v1490_v23 = vadd.f32 %v1458_v29, %v1387_v60  ;;  %v1287_v43 = vadd.f32 %v1255_v5, %v1186_v45  ;;  %v3829_v45 = vld [vmem:[#allocation10_spill] sm:$0xff] }
 0x189   : > { %2373 = vmatprep.mubr.f32.mxu1 %v1761_v1  ;;  %v1730_v37 = vadd.f32 %v3508_v63, %v1691_v47 }
 0x18a   : > { %v1591_v24 = vadd.f32 %v1559_v40, %v1490_v23  ;;  %v1388_v36 = vadd.f32 %v1356_v0, %v1287_v43  ;;  %v3831_v43 = vld [vmem:[#allocation12_spill] sm:$0xff] }
 0x18b   : > { %v1762_v31 = vmax.f32 %v1730_v37, 0.0 }
 0x18c   : > { %v1692_v27 = vadd.f32 %v1660_v49, %v1591_v24  ;;  %v1491_v32 = vadd.f32 %v1458_v29, %v1388_v36 }
 0x18d   : > { %2374 = vmatmul.mubr.f32.gmra.mxu1 %v1762_v31  ;;  %v3832_v31 = vld [vmem:[#allocation13_spill] sm:$0xff] }
 0x18e   : > { %v1731_v2 = vadd.f32 %v3508_v63, %v1692_v27  ;;  %v1592_v26 = vadd.f32 %v1560_v62, %v1491_v32  ;;  %v3833_v32 = vld [vmem:[#allocation14_spill] sm:$0xff] }
 0x190   : > { %v1763_v16 = vmax.f32 %v1731_v2, 0.0  ;;  %v1693_v51 = vadd.f32 %v1661_v6, %v1592_v26 }
 0x192   : > { %2376 = vmatprep.mubr.f32.mxu1 %v1763_v16  ;;  %v1732_v46 = vadd.f32 %v3508_v63, %v1693_v51 }
 0x194   : > { %v1764_v20 = vmax.f32 %v1732_v46, 0.0  ;;  %v3834_v46 = vld [vmem:[#allocation15_spill] sm:$0xff] }
 0x196   : > { %2377 = vmatmul.mubr.f32.gmra.mxu1 %v1764_v20 }
 0x1c0   : > { %v2333_v10 = vpop.f32.mrf.mxu1 }
 0x1c1   : > { %v1860_v52 = vadd.f32 %v2333_v10, %v3695_v44  ;;  %v3835_v10 = vld [vmem:[#allocation16_spill] sm:$0xff] }
 0x1c2   : > { %v1854_v25 = vpop.f32.mrf.mxu1 }
 0x1c3   : > { %v1855_v58 = vadd.f32 %v3695_v44, %v1854_v25  ;;  %v2014_v63 = vadd.f32 %v1860_v52, %v2813_v3 }
 0x1c5   : > { %v2013_v34 = vadd.f32 %v1855_v58, %v2797_v56 }
 0x1c7   : > { %2045 = vxpose.xlu0.b32.start [1/16] (narrow) %v2013_v34, 8 }
 0x1c8   : > { %v2336_v38 = vpop.f32.mrf.mxu1 }
 0x1c9   : > { %v1870_v54 = vadd.f32 %v2336_v38, %v3695_v44 }
 0x1ca   : > { %v1864_v33 = vpop.f32.mrf.mxu1 }
 0x1cb   : > { %2046 = vxpose.xlu0.b32.cont [2/16] (narrow) %v2014_v63, 8  ;;  %v1865_v4 = vadd.f32 %v3695_v44, %v1864_v33  ;;  %v2016_v11 = vadd.f32 %v1870_v54, %v2846_v30  ;;  %v3836_v63 = vld [vmem:[#allocation17_spill] sm:$0xff] }
 0x1cd   : > { %v2015_v42 = vadd.f32 %v1865_v4, %v2821_v15  ;;  %v3837_v4 = vld [vmem:[#allocation18_spill] sm:$0xff] }
 0x1cf   : > { %2047 = vxpose.xlu0.b32.cont [3/16] (narrow) %v2015_v42, 8 }
 0x1d2   : > { %v2339_v41 = vpop.f32.mrf.mxu1 }
 0x1d3   : > { %2048 = vxpose.xlu0.b32.cont [4/16] (narrow) %v2016_v11, 8  ;;  %v1880_v39 = vadd.f32 %v2339_v41, %v3695_v44 }
 0x1d4   : > { %v1874_v13 = vpop.f32.mrf.mxu1 }
 0x1d5   : > { %v1875_v56 = vadd.f32 %v3695_v44, %v1874_v13  ;;  %v2018_v8 = vadd.f32 %v1880_v39, %v2884_v19 }
 0x1d7   : > { %v2017_v3 = vadd.f32 %v1875_v56, %v2868_v55  ;;  %v3838_v56 = vld [vmem:[#allocation20_spill] sm:$0xff] }
 0x1d9   : > { %2049 = vxpose.xlu0.b32.cont [5/16] (narrow) %v2017_v3, 8 }
 0x1dd   : > { %2050 = vxpose.xlu0.b32.cont [6/16] (narrow) %v2018_v8, 8  ;;  %v3839_v8 = vld [vmem:[#allocation21_spill] sm:$0xff] }
 0x1df   : > { %v2342_v57 = vpop.f32.mrf.mxu1 }
 0x1e0   : > { %v1890_v29 = vadd.f32 %v2342_v57, %v3695_v44 }
 0x1e1   : > { %v1884_v18 = vpop.f32.mrf.mxu1 }
 0x1e2   : > { %v1885_v15 = vadd.f32 %v3695_v44, %v1884_v18  ;;  %v2020_v9 = vadd.f32 %v1890_v29, %v2927_v12  ;;  %v3828_v12 = vld [vmem:[#allocation9_spill] sm:$0xff] }
 0x1e4   : > { %v2019_v30 = vadd.f32 %v1885_v15, %v2906_v50 }
 0x1e6   : > { %2051 = vxpose.xlu0.b32.cont [7/16] (narrow) %v2019_v30, 8  ;;  %v3840_v30 = vld [vmem:[#allocation23_spill] sm:$0xff] }
 0x1e9   : > { %v2345_v48 = vpop.f32.mrf.mxu1 }
 0x1ea   : > { %2052 = vxpose.xlu0.b32.cont [8/16] (narrow) %v2020_v9, 8  ;;  %v1900_v5 = vadd.f32 %v2345_v48, %v3695_v44  ;;  %v620_v48 = vpop.f32.mrf.mxu0 }
 0x1eb   : > { %v1894_v21 = vpop.f32.mrf.mxu1 }
 0x1ec   : > { %v1895_v55 = vadd.f32 %v3695_v44, %v1894_v21  ;;  %v2022_v7 = vadd.f32 %v1900_v5, %v2966_v28  ;;  %v3830_v28 = vld [vmem:[#allocation11_spill] sm:$0xff] }
 0x1ee   : > { %v2021_v19 = vadd.f32 %v1895_v55, %v2946_v61 }
 0x1f0   : > { %2053 = vxpose.xlu0.b32.cont [9/16] (narrow) %v2021_v19, 8 }
 0x1f4   : > { %v2348_v40 = vpop.f32.mrf.mxu1  ;;  %2054 = vxpose.xlu0.b32.cont [10/16] (narrow) %v2022_v7, 8 }
 0x1f5   : > { %v1910_v1 = vadd.f32 %v2348_v40, %v3695_v44  ;;  %v3841_v40 = vld [vmem:[#allocation6_spill] sm:$0xff] }
 0x1f6   : > { %v1904_v17 = vpop.f32.mrf.mxu1 }
 0x1f7   : > { %v1905_v50 = vadd.f32 %v3695_v44, %v1904_v17  ;;  %v2024_v0 = vadd.f32 %v1910_v1, %v3829_v45  ;;  %v3842_v1 = vld [vmem:[#allocation7_spill] sm:$0xff] }
 0x1f9   : > { %v2023_v60 = vadd.f32 %v1905_v50, %v3828_v12 }
 0x1fb   : > { %2055 = vxpose.xlu0.b32.cont [11/16] (narrow) %v2023_v60, 8 }
 0x1ff   : > { %v2351_v47 = vpop.f32.mrf.mxu1  ;;  %2056 = vxpose.xlu0.b32.cont [12/16] (narrow) %v2024_v0, 8 }
 0x200   : > { %v1920_v23 = vadd.f32 %v2351_v47, %v3695_v44  ;;  %v3843_v47 = vld [vmem:[#allocation8_spill] sm:$0xff] }
 0x201   : > { %v1914_v53 = vpop.f32.mrf.mxu1 }
 0x202   : > { %v1915_v61 = vadd.f32 %v3695_v44, %v1914_v53  ;;  %v2026_v37 = vadd.f32 %v1920_v23, %v3831_v43 }
 0x204   : > { %v2025_v49 = vadd.f32 %v1915_v61, %v3830_v28  ;;  %v3844_v61 = vld [vmem:[#allocation19_spill] sm:$0xff] }
 0x206   : > { %2057 = vxpose.xlu0.b32.cont [13/16] (narrow) %v2025_v49, 8 }
 0x20a   : > { %v2354_v22 = vpop.f32.mrf.mxu1  ;;  %2058 = vxpose.xlu0.b32.cont [14/16] (narrow) %v2026_v37, 8 }
 0x20b   : > { %v1930_v62 = vadd.f32 %v2354_v22, %v3695_v44  ;;  %v3845_v22 = vld [vmem:[#allocation22_spill] sm:$0xff] }
 0x20c   : > { %v1924_v24 = vpop.f32.mrf.mxu1 }
 0x20d   : > { %v1925_v36 = vadd.f32 %v3695_v44, %v1924_v24  ;;  %v2028_v6 = vadd.f32 %v1930_v62, %v3833_v32 }
 0x20f   : > { %v2027_v27 = vadd.f32 %v1925_v36, %v3832_v31 }
 0x211   : > { %2059 = vxpose.xlu0.b32.cont [15/16] (narrow) %v2027_v27, 8 }
 0x215   : > { %v2357_v2 = vpop.f32.mrf.mxu1  ;;  %2060 = vxpose.xlu0.b32.end [16/16] (narrow) %v2028_v6, 8 }
 0x216   : > { %v1940_v51 = vadd.f32 %v2357_v2, %v3695_v44 }
 0x217   : > { %v1934_v26 = vpop.f32.mrf.mxu1 }
 0x218   : > { %v1935_v16 = vadd.f32 %v3695_v44, %v1934_v26  ;;  %v2030_v25 = vadd.f32 %v1940_v51, %v3835_v10 }
 0x21a   : > { %v2029_v20 = vadd.f32 %v1935_v16, %v3834_v46 }
 0x21c   : > { %2077 = vxpose.xlu1.b32.start [1/16] (narrow) %v2029_v20, 8 }
 0x21f   : > { %v2360_v58 = vpop.f32.mrf.mxu1 }
 0x220   : > { %2078 = vxpose.xlu1.b32.cont [2/16] (narrow) %v2030_v25, 8  ;;  %v1950_v38 = vadd.f32 %v2360_v58, %v3695_v44 }
 0x221   : > { %v1944_v52 = vpop.f32.mrf.mxu1 }
 0x222   : > { %v1945_v34 = vadd.f32 %v3695_v44, %v1944_v52  ;;  %v2032_v54 = vadd.f32 %v1950_v38, %v3837_v4 }
 0x224   : > { %v2031_v33 = vadd.f32 %v1945_v34, %v3836_v63 }
 0x226   : > { %2079 = vxpose.xlu1.b32.cont [3/16] (narrow) %v2031_v33, 8 }
 0x228   : > { %v2363_v42 = vpop.f32.mrf.mxu1 }
 0x229   : > { %v1960_v13 = vadd.f32 %v2363_v42, %v3695_v44 }
 0x22a   : > { %2080 = vxpose.xlu1.b32.cont [4/16] (narrow) %v2032_v54, 8  ;;  %v1954_v41 = vpop.f32.mrf.mxu1 }
 0x22b   : > { %v1955_v11 = vadd.f32 %v3695_v44, %v1954_v41  ;;  %v2034_v57 = vadd.f32 %v1960_v13, %v3839_v8 }
 0x22d   : > { %v2033_v39 = vadd.f32 %v1955_v11, %v3838_v56 }
 0x22f   : > { %2081 = vxpose.xlu1.b32.cont [5/16] (narrow) %v2033_v39, 8 }
 0x232   : > { %v2366_v3 = vpop.f32.mrf.mxu1 }
 0x233   : > { %2082 = vxpose.xlu1.b32.cont [6/16] (narrow) %v2034_v57, 8  ;;  %v1970_v29 = vadd.f32 %v2366_v3, %v3695_v44 }
 0x234   : > { %v1964_v18 = vpop.f32.mrf.mxu1 }
 0x235   : > { %v1965_v15 = vadd.f32 %v3695_v44, %v1964_v18  ;;  %v2036_v55 = vadd.f32 %v1970_v29, %v620_v48 }
 0x237   : > { %v2035_v9 = vadd.f32 %v1965_v15, %v3840_v30 }
 0x239   : > { %2083 = vxpose.xlu1.b32.cont [7/16] (narrow) %v2035_v9, 8 }
 0x23b   : > { %v2369_v21 = vpop.f32.mrf.mxu1 }
 0x23c   : > { %v1980_v7 = vadd.f32 %v2369_v21, %v3695_v44 }
 0x23d   : > { %v1974_v5 = vpop.f32.mrf.mxu1  ;;  %2084 = vxpose.xlu1.b32.cont [8/16] (narrow) %v2036_v55, 8 }
 0x23e   : > { %v1975_v19 = vadd.f32 %v3695_v44, %v1974_v5  ;;  %v2038_v12 = vadd.f32 %v1980_v7, %v3842_v1 }
 0x240   : > { %v2037_v17 = vadd.f32 %v1975_v19, %v3841_v40 }
 0x242   : > { %2085 = vxpose.xlu1.b32.cont [9/16] (narrow) %v2037_v17, 8 }
 0x244   : > { %v2372_v50 = vpop.f32.mrf.mxu1 }
 0x245   : > { %v1990_v0 = vadd.f32 %v2372_v50, %v3695_v44 }
 0x246   : > { %v1984_v60 = vpop.f32.mrf.mxu1  ;;  %2086 = vxpose.xlu1.b32.cont [10/16] (narrow) %v2038_v12, 8 }
 0x247   : > { %v1985_v45 = vadd.f32 %v3695_v44, %v1984_v60  ;;  %v2040_v23 = vadd.f32 %v1990_v0, %v3844_v61 }
 0x249   : > { %v2039_v53 = vadd.f32 %v1985_v45, %v3843_v47 }
 0x24b   : > { %2087 = vxpose.xlu1.b32.cont [11/16] (narrow) %v2039_v53, 8 }
 0x24d   : > { %v2375_v28 = vpop.f32.mrf.mxu1 }
 0x24e   : > { %v2000_v37 = vadd.f32 %v2375_v28, %v3695_v44 }
 0x24f   : > { %2088 = vxpose.xlu1.b32.cont [12/16] (narrow) %v2040_v23, 8  ;;  %v1994_v49 = vpop.f32.mrf.mxu1 }
 0x250   : > { %v1995_v43 = vadd.f32 %v3695_v44, %v1994_v49  ;;  %v2042_v31 = vadd.f32 %v2000_v37, %v3313_v35 }
 0x252   : > { %v2041_v24 = vadd.f32 %v1995_v43, %v3845_v22 }
 0x254   : > { %2089 = vxpose.xlu1.b32.cont [13/16] (narrow) %v2041_v24, 8 }
 0x255   : > { %v2061_v36 = vpop.trf.xlu0 }
 0x256   : > { %2109 = vst [vmem:[%s271_s17] sm:$0xff] %v2061_v36  ;;  %v2378_v62 = vpop.f32.mrf.mxu1 }
 0x257   : > { %v2010_v6 = vadd.f32 %v2378_v62, %v3695_v44 }
 0x258   : > { %v2004_v27 = vpop.f32.mrf.mxu1  ;;  %2090 = vxpose.xlu1.b32.cont [14/16] (narrow) %v2042_v31, 8 }
 0x259   : > { %v2005_v32 = vadd.f32 %v3695_v44, %v2004_v27  ;;  %v2044_v26 = vadd.f32 %v2010_v6, %v3690_v14 }
 0x25b   : > { %v2043_v2 = vadd.f32 %v2005_v32, %v3375_v59 }
 0x25d   : > { %2091 = vxpose.xlu1.b32.cont [15/16] (narrow) %v2043_v2, 8 }
 0x261   : > { %2092 = vxpose.xlu1.b32.end [16/16] (narrow) %v2044_v26, 8 }
 0x2a1   : > { %v2093_v35 = vpop.trf.xlu1 }
 0x2a2   : > { %2110 = vst [vmem:[%s271_s17 + $0x8] sm:$0xff] %v2093_v35 }
 0x2a3   : > { %2449 = shalt.err (!%p2446_p3)
}
 0x2a4   : > { %s2450_s13 = scalar_lea.hbm %s2124_s22, 256  ;;  %s2454_s16 = scalar_lea.hbm %s3807_s7, 512 }
 0x2a5   : > { %p2451_p4 = scmp.ne.s32.totalorder %s2124_s22, %s2450_s13  ;;  %p2455_p9 = scmp.lt.s32.totalorder %s2124_s22, %s3807_s7 }
 0x2a6   : > { %p2456_p10 = scmp.lt.s32.totalorder %s2454_s16, %s2450_s13 }
 0x2a7   : > { %p2452_p7 = pnand %p2451_p4, %p2578_p5 }
 0x2a8   : > { %p2457_p11 = por %p2456_p10, %p2455_p9 }
 0x2a9   : > { %p2453_p8 = pneg %p2452_p7 }
 0x2ab   : > { %p2458_p12 = pnand %p2457_p11, %p2453_p8 }
 0x2ad   : > { %2461 = shalt.err (!%p2458_p12)
}
 0x2ae   : > { %2381 = dma.vmem_to_hbm [thread:$0]  (%p2578_p5), %s3762_s18, 256, %s2124_s22, %s2112_s23  }
 0x2af PF: > { %p2387_p13 = scmp.ge.s32.totalorder %s2496_s27, 2  ;;  %s2138_s21 = sand.u32 1, %s2484_s24  }
 0x2b0   : > { %s2139_s19 = scalar_lea.sflag [#allocation4], %s2138_s21 }
 0x2b1   : > { %p2384_p0 = pnand %p2387_p13, %p2582_p6 }
 0x2b3   : > { %p2385_p1 = pneg %p2384_p0 }
 0x2b5   : > { %2479 = dma.done.wait (%p2385_p1), %s2139_s19, 256  }
 0x2b6   : > { %2481 = vsyncadd (%p2385_p1), %s2139_s19, 4294967040  ;;  %p17_p2 = scmp.ge.s32.totalorder %s2565_s30, 4   ;;  %s3846_s24 = smov %s2488_s25 }
 0x2b7   : > { %s3847_s25 = smov %s2492_s26  ;;  %s3848_s26 = smov %s2576_s10 }
 0x2b8   : > { %s3849_s27 = smov %s2565_s30  ;;  %19 = sbr.rel (!%p17_p2) target bundleno = 3 (0x3), region = 88 }
 0x2bd   :  { %2144 = vsyncpa [#allocation4], 1 }
 0x2be   :  { %2146 = vsyncpa [#allocation4 + $0x1], 1 }

</bundles_post_ra>
